<compile_context>
chip_gen: v7x
topology: tpu7x:2x2x1
jax: 0.10.0
libtpu: 0.0.40
codegen_flags: <defaults>
</compile_context>

<pallas_src>
import jax
import jax.numpy as jnp
import numpy as np
from jax.experimental import pallas as pl
from jax.experimental.pallas import tpu as pltpu

# ---- Config (stand-ins for FLAGS) ------------------------------------------
FEAT_C_TS = 128                 # FLAGS.feat_c_ts (small synthetic value)
F_IN = FEAT_C_TS + 384          # = 512, module's self.f
TS_C = 6                        # FLAGS.Ts_c (forward slices [:3] and [3:6])
C1, C2, C3 = 1024, 256, 256     # hidden widths hard-coded in the module
BN_EPS = 1e-5
OUT_PAD = 128                   # lane-dense padded output width (real outputs in [:TS_C])


# ---- Pallas kernel: one batch tile (TB elements) per grid step ---------------
def pose_ts_kernel(x_ref,              # (TB, N, F_IN)   bf16
                   w1_ref, t1_ref,     # (F_IN, C1) bf16, (1, C1) f32  (BN scale folded into w1)
                   w2_ref, t2_ref,     # (C1, C2)   bf16, (1, C2) f32
                   w3_ref, t3_ref,     # (C2, C3)   bf16, (1, C3) f32
                   w4_ref, b4_ref,     # (C3, OUT_PAD) bf16, (1, OUT_PAD) f32
                   out_ref):           # (TB, OUT_PAD) f32
    tb, n, f = x_ref.shape
    x = x_ref[...].reshape(tb * n, f)                       # flatten batch*points -> MXU M dim

    # conv1 + bn1 + relu1 (scale pre-folded into w1; epilogue is add + ReLU only)
    h1 = jnp.dot(x, w1_ref[...], preferred_element_type=jnp.float32)
    h1 = jnp.maximum(h1 + t1_ref[...], 0.0).astype(jnp.bfloat16)      # (tb*n, C1)

    # conv2 + bn2 + relu2
    h2 = jnp.dot(h1, w2_ref[...], preferred_element_type=jnp.float32)
    h2 = jnp.maximum(h2 + t2_ref[...], 0.0)                           # (tb*n, C2) f32

    # torch.max(x, 2, keepdim=True)[0]: max over points, per batch element
    pooled = jnp.max(h2.reshape(tb, n, -1), axis=1)                   # (tb, C2) f32
    pooled = pooled.astype(jnp.bfloat16)

    # conv3 + bn3 + relu3
    h3 = jnp.dot(pooled, w3_ref[...], preferred_element_type=jnp.float32)
    h3 = jnp.maximum(h3 + t3_ref[...], 0.0).astype(jnp.bfloat16)      # (tb, C3)

    # drop1: Dropout(0.2) in eval mode == identity
    # conv4 (+ bias); w4/b4 are zero-padded to OUT_PAD lanes -> unmasked stores
    y = jnp.dot(h3, w4_ref[...], preferred_element_type=jnp.float32) + b4_ref[...]
    out_ref[...] = y                                                  # (tb, OUT_PAD)


# ---- Wrapper -----------------------------------------------------------------
def pose_ts_forward(x_ncw, params, *, tb=None):
    """x_ncw: (B, F_IN, N) float32 (PyTorch NCW). Returns (xt, xs) each (B, 3)."""
    B, f, N = x_ncw.shape
    assert f == F_IN

    # Batch-tile size: take the whole batch in one step when it fits comfortably,
    # otherwise pick a multiple-of-8 divisor of B (keeps the output BlockSpec legal).
    if tb is None:
        max_rows = 4096
        if B * N <= max_rows:
            tb = B
        else:
            cands = [d for d in range(8, B + 1, 8) if B % d == 0 and d * N <= max_rows]
            tb = max(cands) if cands else B
    grid = (B // tb,)

    # NCW -> (B, N, F): points on sublanes, channels on lanes. bf16 feeds the MXU.
    # (In a real pipeline, fuse this transpose into the producer of x.)
    x_bnf = jnp.transpose(x_ncw, (0, 2, 1)).astype(jnp.bfloat16)

    def fold(w_oc_ic, bias, gamma, beta, mean, var):
        # conv1d(k=1): y = x @ W^T + b ; BN eval: scale*y + (beta - scale*mean)
        # Fold scale into the weight columns (done in f32, then cast to bf16).
        scale = gamma / jnp.sqrt(var + BN_EPS)
        w = (jnp.transpose(w_oc_ic) * scale[None, :]).astype(jnp.bfloat16)   # (Cin, Cout)
        shift = ((bias - mean) * scale + beta)[None, :].astype(jnp.float32)  # (1, Cout)
        return w, shift

    w1, t1 = fold(params["w1"], params["b1"], params["g1"], params["be1"],
                  params["m1"], params["v1"])
    w2, t2 = fold(params["w2"], params["b2"], params["g2"], params["be2"],
                  params["m2"], params["v2"])
    w3, t3 = fold(params["w3"], params["b3"], params["g3"], params["be3"],
                  params["m3"], params["v3"])

    # conv4: zero-pad the 6-wide output to 128 lanes for a clean MXU tile + unmasked stores.
    w4 = jnp.zeros((C3, OUT_PAD), jnp.float32).at[:, :TS_C].set(jnp.transpose(params["w4"]))
    w4 = w4.astype(jnp.bfloat16)
    b4 = jnp.zeros((1, OUT_PAD), jnp.float32).at[:, :TS_C].set(params["b4"][None, :])

    def const_spec(shape):
        nd = len(shape)
        return pl.BlockSpec(shape, lambda i, _nd=nd: (0,) * _nd)

    out = pl.pallas_call(
        pose_ts_kernel,
        out_shape=jax.ShapeDtypeStruct((B, OUT_PAD), jnp.float32),
        grid=grid,
        in_specs=[
            pl.BlockSpec((tb, N, f), lambda i: (i, 0, 0)),
            const_spec(w1.shape), const_spec(t1.shape),
            const_spec(w2.shape), const_spec(t2.shape),
            const_spec(w3.shape), const_spec(t3.shape),
            const_spec(w4.shape), const_spec(b4.shape),
        ],
        # Each step writes its own disjoint (tb, OUT_PAD) block -> axis is parallel
        # (lets v7x split batch tiles across its two TensorCores; no-op on v5e/v6e).
        out_specs=pl.BlockSpec((tb, OUT_PAD), lambda i: (i, 0)),
        compiler_params=pltpu.CompilerParams(dimension_semantics=("parallel",)),
        # Weight specs have constant index_maps; at grid=(1,) (the test config) there is
        # no revisiting, so default buffering costs nothing. When scaling TB/N on v7x,
        # single-buffer the weights and re-check the 64 MiB VMEM budget.
    )(x_bnf, w1, t1, w2, t2, w3, t3, w4, b4)

    xt = out[:, 0:3]
    xs = out[:, 3:6]
    return xt, xs


# ---- Pure-JAX f32 reference (for correctness check) -------------------------
def pose_ts_reference(x_ncw, params):
    def conv_bn_relu(x, w, b, g, be, m, v):
        y = jnp.einsum("oc,bcn->bon", w, x) + b[None, :, None]
        y = g[None, :, None] * (y - m[None, :, None]) / jnp.sqrt(
            v[None, :, None] + BN_EPS) + be[None, :, None]
        return jnp.maximum(y, 0.0)

    h = conv_bn_relu(x_ncw, params["w1"], params["b1"], params["g1"],
                     params["be1"], params["m1"], params["v1"])
    h = conv_bn_relu(h, params["w2"], params["b2"], params["g2"],
                     params["be2"], params["m2"], params["v2"])
    h = jnp.max(h, axis=2, keepdims=True)
    h = conv_bn_relu(h, params["w3"], params["b3"], params["g3"],
                     params["be3"], params["m3"], params["v3"])
    y = jnp.einsum("oc,bcn->bon", params["w4"], h) + params["b4"][None, :, None]
    y = y[:, :, 0]
    return y[:, 0:3], y[:, 3:6]


# ---- Deterministic parameter construction -----------------------------------
def make_params(key):
    ks = jax.random.split(key, 24)
    p = {}
    # conv weights in PyTorch layout (out_ch, in_ch) (kernel dim of size 1 dropped)
    p["w1"] = 0.05 * jax.random.normal(ks[0], (C1, F_IN), jnp.float32)
    p["b1"] = 0.05 * jax.random.normal(ks[1], (C1,), jnp.float32)
    p["w2"] = 0.05 * jax.random.normal(ks[2], (C2, C1), jnp.float32)
    p["b2"] = 0.05 * jax.random.normal(ks[3], (C2,), jnp.float32)
    p["w3"] = 0.05 * jax.random.normal(ks[4], (C3, C2), jnp.float32)
    p["b3"] = 0.05 * jax.random.normal(ks[5], (C3,), jnp.float32)
    p["w4"] = 0.05 * jax.random.normal(ks[6], (TS_C, C3), jnp.float32)
    p["b4"] = 0.05 * jax.random.normal(ks[7], (TS_C,), jnp.float32)
    # BatchNorm (eval mode): gamma, beta, running_mean, running_var (independent keys)
    for i, c, ki in ((1, C1, 8), (2, C2, 12), (3, C3, 16)):
        p[f"g{i}"] = 1.0 + 0.1 * jax.random.normal(ks[ki], (c,), jnp.float32)
        p[f"be{i}"] = 0.1 * jax.random.normal(ks[ki + 1], (c,), jnp.float32)
        p[f"m{i}"] = 0.1 * jax.random.normal(ks[ki + 2], (c,), jnp.float32)
        p[f"v{i}"] = jax.random.uniform(ks[ki + 3], (c,), jnp.float32, 0.5, 1.5)
    return p


if __name__ == "__main__":
    key = jax.random.PRNGKey(0)
    kx, kp = jax.random.split(key)

    B, N = 2, 16
    x = jax.random.normal(kx, (B, F_IN, N), jnp.float32)   # PyTorch NCW layout
    params = make_params(kp)

    xt, xs = jax.jit(pose_ts_forward)(x, params)
    jax.block_until_ready((xt, xs))

    # Kernel runs in bf16 with f32 accumulation -> compare to f32 reference loosely.
    xt_ref, xs_ref = pose_ts_reference(x, params)
    np.testing.assert_allclose(np.asarray(xt), np.asarray(xt_ref), rtol=5e-2, atol=5e-2)
    np.testing.assert_allclose(np.asarray(xs), np.asarray(xs_ref), rtol=5e-2, atol=5e-2)
    assert xt.shape == (B, 3) and xs.shape == (B, 3)

    print("KERNEL_OK")
</pallas_src>

<mosaic_0001>
module attributes {stable_mosaic.version = 11 : i64} {
  func.func @pose_ts_kernel(%arg0: i32, %arg1: memref<2x16x512xbf16, #tpu.memory_space<vmem>>, %arg2: memref<512x1024xbf16, #tpu.memory_space<vmem>>, %arg3: memref<1x1024xf32, #tpu.memory_space<vmem>>, %arg4: memref<1024x256xbf16, #tpu.memory_space<vmem>>, %arg5: memref<1x256xf32, #tpu.memory_space<vmem>>, %arg6: memref<256x256xbf16, #tpu.memory_space<vmem>>, %arg7: memref<1x256xf32, #tpu.memory_space<vmem>>, %arg8: memref<256x128xbf16, #tpu.memory_space<vmem>>, %arg9: memref<1x128xf32, #tpu.memory_space<vmem>>, %arg10: memref<2x128xf32, #tpu.memory_space<vmem>>) attributes {dimension_semantics = [#tpu.dimension_semantics<parallel>], iteration_bounds = array<i64: 1>, scalar_prefetch = 0 : i64, scratch_operands = 0 : i64, tpu.core_type = #tpu.core_type<tc>, window_params = [{transform_indices = @transform_0, window_bounds = array<i64: 2, 16, 512>}, {pipeline_mode = #tpu.pipeline_mode<synchronous>, transform_indices = @transform_1, window_bounds = array<i64: 512, 1024>}, {pipeline_mode = #tpu.pipeline_mode<synchronous>, transform_indices = @transform_2, window_bounds = array<i64: 1, 1024>}, {pipeline_mode = #tpu.pipeline_mode<synchronous>, transform_indices = @transform_3, window_bounds = array<i64: 1024, 256>}, {pipeline_mode = #tpu.pipeline_mode<synchronous>, transform_indices = @transform_4, window_bounds = array<i64: 1, 256>}, {pipeline_mode = #tpu.pipeline_mode<synchronous>, transform_indices = @transform_5, window_bounds = array<i64: 256, 256>}, {pipeline_mode = #tpu.pipeline_mode<synchronous>, transform_indices = @transform_6, window_bounds = array<i64: 1, 256>}, {pipeline_mode = #tpu.pipeline_mode<synchronous>, transform_indices = @transform_7, window_bounds = array<i64: 256, 128>}, {pipeline_mode = #tpu.pipeline_mode<synchronous>, transform_indices = @transform_8, window_bounds = array<i64: 1, 128>}, {transform_indices = @transform_9, window_bounds = array<i64: 2, 128>}]} {
    %c0 = arith.constant 0 : index
    %c0_0 = arith.constant 0 : index
    %c0_1 = arith.constant 0 : index
    %0 = vector.load %arg1[%c0, %c0_0, %c0_1] : memref<2x16x512xbf16, #tpu.memory_space<vmem>>, vector<2x16x512xbf16>
    %1 = vector.shape_cast %0 : vector<2x16x512xbf16> to vector<32x512xbf16>
    %c0_2 = arith.constant 0 : index
    %c0_3 = arith.constant 0 : index
    %2 = vector.load %arg2[%c0_2, %c0_3] : memref<512x1024xbf16, #tpu.memory_space<vmem>>, vector<512x1024xbf16>
    %cst = arith.constant dense<0.000000e+00> : vector<32x1024xf32>
    %3 = tpu.matmul %1, %2, %cst {dimension_numbers = #tpu.dot_dimension_numbers<[1], [0], [0], [1], [0, 0, 1, 1], [], []>} : vector<32x512xbf16>, vector<512x1024xbf16>, vector<32x1024xf32> -> vector<32x1024xf32>
    %c0_4 = arith.constant 0 : index
    %c0_5 = arith.constant 0 : index
    %4 = vector.load %arg3[%c0_4, %c0_5] : memref<1x1024xf32, #tpu.memory_space<vmem>>, vector<1x1024xf32>
    %5 = vector.broadcast %4 : vector<1x1024xf32> to vector<32x1024xf32>
    %6 = arith.addf %3, %5 : vector<32x1024xf32>
    %cst_6 = arith.constant 0.000000e+00 : f32
    %7 = vector.broadcast %cst_6 : f32 to vector<32x1024xf32>
    %8 = arith.maximumf %6, %7 : vector<32x1024xf32>
    %9 = arith.truncf %8 : vector<32x1024xf32> to vector<32x1024xbf16>
    %c0_7 = arith.constant 0 : index
    %c0_8 = arith.constant 0 : index
    %10 = vector.load %arg4[%c0_7, %c0_8] : memref<1024x256xbf16, #tpu.memory_space<vmem>>, vector<1024x256xbf16>
    %cst_9 = arith.constant dense<0.000000e+00> : vector<32x256xf32>
    %11 = tpu.matmul %9, %10, %cst_9 {dimension_numbers = #tpu.dot_dimension_numbers<[1], [0], [0], [1], [0, 0, 1, 1], [], []>} : vector<32x1024xbf16>, vector<1024x256xbf16>, vector<32x256xf32> -> vector<32x256xf32>
    %c0_10 = arith.constant 0 : index
    %c0_11 = arith.constant 0 : index
    %12 = vector.load %arg5[%c0_10, %c0_11] : memref<1x256xf32, #tpu.memory_space<vmem>>, vector<1x256xf32>
    %13 = vector.broadcast %12 : vector<1x256xf32> to vector<32x256xf32>
    %14 = arith.addf %11, %13 : vector<32x256xf32>
    %cst_12 = arith.constant 0.000000e+00 : f32
    %15 = vector.broadcast %cst_12 : f32 to vector<32x256xf32>
    %16 = arith.maximumf %14, %15 : vector<32x256xf32>
    %17 = vector.shape_cast %16 : vector<32x256xf32> to vector<2x16x256xf32>
    %cst_13 = arith.constant dense<0xFF800000> : vector<2x256xf32>
    %18 = vector.multi_reduction <maximumf>, %17, %cst_13 [1] : vector<2x16x256xf32> to vector<2x256xf32>
    %19 = arith.truncf %18 : vector<2x256xf32> to vector<2x256xbf16>
    %c0_14 = arith.constant 0 : index
    %c0_15 = arith.constant 0 : index
    %20 = vector.load %arg6[%c0_14, %c0_15] : memref<256x256xbf16, #tpu.memory_space<vmem>>, vector<256x256xbf16>
    %cst_16 = arith.constant dense<0.000000e+00> : vector<2x256xf32>
    %21 = tpu.matmul %19, %20, %cst_16 {dimension_numbers = #tpu.dot_dimension_numbers<[1], [0], [0], [1], [0, 0, 1, 1], [], []>} : vector<2x256xbf16>, vector<256x256xbf16>, vector<2x256xf32> -> vector<2x256xf32>
    %c0_17 = arith.constant 0 : index
    %c0_18 = arith.constant 0 : index
    %22 = vector.load %arg7[%c0_17, %c0_18] : memref<1x256xf32, #tpu.memory_space<vmem>>, vector<1x256xf32>
    %23 = vector.broadcast %22 : vector<1x256xf32> to vector<2x256xf32>
    %24 = arith.addf %21, %23 : vector<2x256xf32>
    %cst_19 = arith.constant 0.000000e+00 : f32
    %25 = vector.broadcast %cst_19 : f32 to vector<2x256xf32>
    %26 = arith.maximumf %24, %25 : vector<2x256xf32>
    %27 = arith.truncf %26 : vector<2x256xf32> to vector<2x256xbf16>
    %c0_20 = arith.constant 0 : index
    %c0_21 = arith.constant 0 : index
    %28 = vector.load %arg8[%c0_20, %c0_21] : memref<256x128xbf16, #tpu.memory_space<vmem>>, vector<256x128xbf16>
    %cst_22 = arith.constant dense<0.000000e+00> : vector<2x128xf32>
    %29 = tpu.matmul %27, %28, %cst_22 {dimension_numbers = #tpu.dot_dimension_numbers<[1], [0], [0], [1], [0, 0, 1, 1], [], []>} : vector<2x256xbf16>, vector<256x128xbf16>, vector<2x128xf32> -> vector<2x128xf32>
    %c0_23 = arith.constant 0 : index
    %c0_24 = arith.constant 0 : index
    %30 = vector.load %arg9[%c0_23, %c0_24] : memref<1x128xf32, #tpu.memory_space<vmem>>, vector<1x128xf32>
    %31 = vector.broadcast %30 : vector<1x128xf32> to vector<2x128xf32>
    %32 = arith.addf %29, %31 : vector<2x128xf32>
    %c0_25 = arith.constant 0 : index
    %c0_26 = arith.constant 0 : index
    %33 = vector.load %arg10[%c0_25, %c0_26] : memref<2x128xf32, #tpu.memory_space<vmem>>, vector<2x128xf32>
    tpu.vector_store %arg10[%c0_25, %c0_26], %32 {strides = array<i32>} : memref<2x128xf32, #tpu.memory_space<vmem>>, vector<2x128xf32>,
    return
  }
  func.func @transform_0(%arg0: i32) -> (i32, i32, i32) {
    %c0_i32 = arith.constant 0 : i32
    %c0_i32_0 = arith.constant 0 : i32
    %c0_i32_1 = arith.constant 0 : i32
    return %arg0, %c0_i32, %c0_i32_0 : i32, i32, i32
  }
  func.func @transform_1(%arg0: i32) -> (i32, i32) {
    %c0_i32 = arith.constant 0 : i32
    %c0_i32_0 = arith.constant 0 : i32
    %c0_i32_1 = arith.constant 0 : i32
    return %c0_i32, %c0_i32_0 : i32, i32
  }
  func.func @transform_2(%arg0: i32) -> (i32, i32) {
    %c0_i32 = arith.constant 0 : i32
    %c0_i32_0 = arith.constant 0 : i32
    %c0_i32_1 = arith.constant 0 : i32
    return %c0_i32, %c0_i32_0 : i32, i32
  }
  func.func @transform_3(%arg0: i32) -> (i32, i32) {
    %c0_i32 = arith.constant 0 : i32
    %c0_i32_0 = arith.constant 0 : i32
    %c0_i32_1 = arith.constant 0 : i32
    return %c0_i32, %c0_i32_0 : i32, i32
  }
  func.func @transform_4(%arg0: i32) -> (i32, i32) {
    %c0_i32 = arith.constant 0 : i32
    %c0_i32_0 = arith.constant 0 : i32
    %c0_i32_1 = arith.constant 0 : i32
    return %c0_i32, %c0_i32_0 : i32, i32
  }
  func.func @transform_5(%arg0: i32) -> (i32, i32) {
    %c0_i32 = arith.constant 0 : i32
    %c0_i32_0 = arith.constant 0 : i32
    %c0_i32_1 = arith.constant 0 : i32
    return %c0_i32, %c0_i32_0 : i32, i32
  }
  func.func @transform_6(%arg0: i32) -> (i32, i32) {
    %c0_i32 = arith.constant 0 : i32
    %c0_i32_0 = arith.constant 0 : i32
    %c0_i32_1 = arith.constant 0 : i32
    return %c0_i32, %c0_i32_0 : i32, i32
  }
  func.func @transform_7(%arg0: i32) -> (i32, i32) {
    %c0_i32 = arith.constant 0 : i32
    %c0_i32_0 = arith.constant 0 : i32
    %c0_i32_1 = arith.constant 0 : i32
    return %c0_i32, %c0_i32_0 : i32, i32
  }
  func.func @transform_8(%arg0: i32) -> (i32, i32) {
    %c0_i32 = arith.constant 0 : i32
    %c0_i32_0 = arith.constant 0 : i32
    %c0_i32_1 = arith.constant 0 : i32
    return %c0_i32, %c0_i32_0 : i32, i32
  }
  func.func @transform_9(%arg0: i32) -> (i32, i32) {
    %c0_i32 = arith.constant 0 : i32
    %c0_i32_0 = arith.constant 0 : i32
    return %arg0, %c0_i32 : i32, i32
  }
}

</mosaic_0001>

<bundles_post_ra>
// kernel: pose_ts_forward.1
= control target key start
LH: loop header
LB: loop body
LE: loop exit
PB: predicated region body
PF: predicated region fallthrough
CT: control target
= control target key end

     0   :  { %vm3215_vm0 = vcmask 1041409   ;;  %s5930_s1 = inlined_call_operand.vmem [shape: bf16[512,1024], index: 1, kind: input, shape index: {}]   ;;  %s5931_s0 = inlined_call_operand.vmem [shape: bf16[2,16,512], index: 0, kind: input, shape index: {}]   ;;  %s5932_s3 = inlined_call_operand.vmem [shape: bf16[1024,256], index: 3, kind: input, shape index: {}]   ;;  %s5933_s2 = inlined_call_operand.vmem [shape: f32[1,1024], index: 2, kind: input, shape index: {}]   ;;  %s5934_s5 = inlined_call_operand.vmem [shape: bf16[256,256], index: 5, kind: input, shape index: {}]   ;;  %s5935_s7 = inlined_call_operand.vmem [shape: bf16[256,128], index: 7, kind: input, shape index: {}]   ;;  %s5936_s4 = inlined_call_operand.vmem [shape: f32[1,256], index: 4, kind: input, shape index: {}]   ;;  %s5937_s6 = inlined_call_operand.vmem [shape: f32[1,256], index: 6, kind: input, shape index: {}]   ;;  %s5938_s8 = inlined_call_operand.vmem [shape: f32[1,128], index: 8, kind: input, shape index: {}]   ;;  %s5939_s9 = inlined_call_operand.vmem [shape: f32[2,128], index: 9, kind: output, shape index: {}]  }
   0x1   :  { %v41_v0 = vld [vmem:[%s5930_s1] sm:$0xff]  ;;  %v4596_v59 = vld [vmem:[%s5931_s0 + $0xc] ss:$16 sps:$4 sm:$0xff]  }
   0x2   :  { %v45_v1 = vld [vmem:[%s5930_s1 + $0x20] sm:$0xff]  ;;  %1744 = vmatprep.mubr.bf16.mxu0 %v4596_v59 }
   0x3   :  { %v169_v2 = vld [vmem:[%s5930_s1 + $0x400] sm:$0xff]  ;;  %v3616_v3 = vcombine.high %v41_v0, %v45_v1  ;;  %v3615_v5 = vcombine.low %v41_v0, %v45_v1 }
   0x4   :  { %v173_v4 = vld [vmem:[%s5930_s1 + $0x420] sm:$0xff] }
   0x5   :  { %v49_v6 = vld [vmem:[%s5930_s1 + $0x40] sm:$0xff]  ;;  %v3744_v8 = vcombine.high %v169_v2, %v173_v4  ;;  %v3743_v9 = vcombine.low %v169_v2, %v173_v4  ;;  %1659 = vmatprep.subr.bf16.mxu1 %v3616_v3 }
   0x6   :  { %v53_v7 = vld [vmem:[%s5930_s1 + $0x60] sm:$0xff]  ;;  %1660 = vmatpush1.bf16.msra.mxu1 %v3615_v5 }
   0x7   :  { %v3624_v10 = vcombine.high %v49_v6, %v53_v7  ;;  %v177_v11 = vld [vmem:[%s5930_s1 + $0x440] sm:$0xff]  ;;  %1712 = vmatprep.subr.bf16.mxu0 %v3744_v8  ;;  %v3623_v18 = vcombine.low %v49_v6, %v53_v7 }
   0x8   :  { %v181_v12 = vld [vmem:[%s5930_s1 + $0x460] sm:$0xff]  ;;  %1713 = vmatpush1.bf16.msra.mxu0 %v3743_v9 }
   0x9   :  { %v57_v13 = vld [vmem:[%s5930_s1 + $0x80] sm:$0xff]  ;;  %v3752_v14 = vcombine.high %v177_v11, %v181_v12  ;;  %1661 = vmatprep.subr.bf16.mxu1 %v3624_v10  ;;  %v3751_v19 = vcombine.low %v177_v11, %v181_v12 }
   0xa   :  { %v61_v15 = vld [vmem:[%s5930_s1 + $0xa0] sm:$0xff]  ;;  %1662 = vmatpush1.bf16.msra.mxu1 %v3623_v18 }
   0xb   :  { %v185_v16 = vld [vmem:[%s5930_s1 + $0x480] sm:$0xff]  ;;  %v3632_v20 = vcombine.high %v57_v13, %v61_v15  ;;  %1714 = vmatprep.subr.bf16.mxu0 %v3752_v14  ;;  %v3631_v26 = vcombine.low %v57_v13, %v61_v15 }
   0xc   :  { %v189_v17 = vld [vmem:[%s5930_s1 + $0x4a0] sm:$0xff]  ;;  %1715 = vmatpush1.bf16.msra.mxu0 %v3751_v19 }
   0xd   :  { %v3760_v21 = vcombine.high %v185_v16, %v189_v17  ;;  %v65_v22 = vld [vmem:[%s5930_s1 + $0xc0] sm:$0xff]  ;;  %1663 = vmatprep.subr.bf16.mxu1 %v3632_v20  ;;  %v3759_v27 = vcombine.low %v185_v16, %v189_v17 }
   0xe   :  { %v69_v23 = vld [vmem:[%s5930_s1 + $0xe0] sm:$0xff]  ;;  %1664 = vmatpush1.bf16.msra.mxu1 %v3631_v26 }
   0xf   :  { %v193_v24 = vld [vmem:[%s5930_s1 + $0x4c0] sm:$0xff]  ;;  %v3640_v28 = vcombine.high %v65_v22, %v69_v23  ;;  %1716 = vmatprep.subr.bf16.mxu0 %v3760_v21  ;;  %v3639_v34 = vcombine.low %v65_v22, %v69_v23 }
  0x10   :  { %v197_v25 = vld [vmem:[%s5930_s1 + $0x4e0] sm:$0xff]  ;;  %1717 = vmatpush1.bf16.msra.mxu0 %v3759_v27 }
  0x11   :  { %v3768_v29 = vcombine.high %v193_v24, %v197_v25  ;;  %v73_v30 = vld [vmem:[%s5930_s1 + $0x100] sm:$0xff]  ;;  %1665 = vmatprep.subr.bf16.mxu1 %v3640_v28  ;;  %v3767_v35 = vcombine.low %v193_v24, %v197_v25 }
  0x12   :  { %v77_v31 = vld [vmem:[%s5930_s1 + $0x120] sm:$0xff]  ;;  %1666 = vmatpush1.bf16.msra.mxu1 %v3639_v34 }
  0x13   :  { %v201_v32 = vld [vmem:[%s5930_s1 + $0x500] sm:$0xff]  ;;  %v3648_v36 = vcombine.high %v73_v30, %v77_v31  ;;  %1718 = vmatprep.subr.bf16.mxu0 %v3768_v29  ;;  %v3647_v42 = vcombine.low %v73_v30, %v77_v31 }
  0x14   :  { %v205_v33 = vld [vmem:[%s5930_s1 + $0x520] sm:$0xff]  ;;  %1719 = vmatpush1.bf16.msra.mxu0 %v3767_v35 }
  0x15   :  { %v3776_v37 = vcombine.high %v201_v32, %v205_v33  ;;  %v81_v38 = vld [vmem:[%s5930_s1 + $0x140] sm:$0xff]  ;;  %1667 = vmatprep.subr.bf16.mxu1 %v3648_v36  ;;  %v3775_v43 = vcombine.low %v201_v32, %v205_v33 }
  0x16   :  { %v85_v39 = vld [vmem:[%s5930_s1 + $0x160] sm:$0xff]  ;;  %1668 = vmatpush1.bf16.msra.mxu1 %v3647_v42 }
  0x17   :  { %v209_v40 = vld [vmem:[%s5930_s1 + $0x540] sm:$0xff]  ;;  %v3656_v44 = vcombine.high %v81_v38, %v85_v39  ;;  %1720 = vmatprep.subr.bf16.mxu0 %v3776_v37  ;;  %v3655_v50 = vcombine.low %v81_v38, %v85_v39 }
  0x18   :  { %v213_v41 = vld [vmem:[%s5930_s1 + $0x560] sm:$0xff]  ;;  %1721 = vmatpush1.bf16.msra.mxu0 %v3775_v43 }
  0x19   :  { %v3784_v45 = vcombine.high %v209_v40, %v213_v41  ;;  %v89_v46 = vld [vmem:[%s5930_s1 + $0x180] sm:$0xff]  ;;  %1669 = vmatprep.subr.bf16.mxu1 %v3656_v44  ;;  %v3783_v52 = vcombine.low %v209_v40, %v213_v41 }
  0x1a   :  { %v93_v47 = vld [vmem:[%s5930_s1 + $0x1a0] sm:$0xff]  ;;  %1670 = vmatpush1.bf16.msra.mxu1 %v3655_v50 }
  0x1b   :  { %v217_v48 = vld [vmem:[%s5930_s1 + $0x580] sm:$0xff]  ;;  %v3664_v53 = vcombine.high %v89_v46, %v93_v47  ;;  %1722 = vmatprep.subr.bf16.mxu0 %v3784_v45  ;;  %v3663_v60 = vcombine.low %v89_v46, %v93_v47 }
  0x1c   :  { %v221_v49 = vld [vmem:[%s5930_s1 + $0x5a0] sm:$0xff]  ;;  %1723 = vmatpush1.bf16.msra.mxu0 %v3783_v52 }
  0x1d   :  { %v97_v51 = vld [vmem:[%s5930_s1 + $0x1c0] sm:$0xff]  ;;  %v3792_v55 = vcombine.high %v217_v48, %v221_v49  ;;  %1671 = vmatprep.subr.bf16.mxu1 %v3664_v53  ;;  %v3791_v61 = vcombine.low %v217_v48, %v221_v49 }
  0x1e   :  { %v101_v54 = vld [vmem:[%s5930_s1 + $0x1e0] sm:$0xff]  ;;  %1672 = vmatpush1.bf16.msra.mxu1 %v3663_v60 }
  0x1f   :  { %v225_v56 = vld [vmem:[%s5930_s1 + $0x5c0] sm:$0xff]  ;;  %v3672_v62 = vcombine.high %v97_v51, %v101_v54  ;;  %1724 = vmatprep.subr.bf16.mxu0 %v3792_v55  ;;  %v3671_v4 = vcombine.low %v97_v51, %v101_v54 }
  0x20   :  { %v4588_v57 = vld [vmem:[%s5931_s0 + $0x4] ss:$16 sps:$4 sm:$0xff]   ;;  %1725 = vmatpush1.bf16.msra.mxu0 %v3791_v61 }
  0x21   :  { %v229_v58 = vld [vmem:[%s5930_s1 + $0x5e0] sm:$0xff]  ;;  %1691 = vmatprep.mubr.bf16.mxu1 %v4588_v57  ;;  %1673 = vmatprep.subr.bf16.mxu1 %v3672_v62 }
  0x22   :  { %v3800_v63 = vcombine.high %v225_v56, %v229_v58  ;;  %v105_v0 = vld [vmem:[%s5930_s1 + $0x200] sm:$0xff]  ;;  %v3799_v5 = vcombine.low %v225_v56, %v229_v58  ;;  %1674 = vmatpush1.bf16.msra.mxu1 %v3671_v4  ;;  %v43_v4 = vld [vmem:[%s5930_s1 + $0x10] sm:$0xff] }
  0x23   :  { %v109_v1 = vld [vmem:[%s5930_s1 + $0x220] sm:$0xff] }
  0x24   :  { %v233_v2 = vld [vmem:[%s5930_s1 + $0x600] sm:$0xff]  ;;  %v3680_v6 = vcombine.high %v105_v0, %v109_v1  ;;  %1726 = vmatprep.subr.bf16.mxu0 %v3800_v63  ;;  %v3679_v12 = vcombine.low %v105_v0, %v109_v1 }
  0x25   :  { %v237_v3 = vld [vmem:[%s5930_s1 + $0x620] sm:$0xff]  ;;  %1727 = vmatpush1.bf16.msra.mxu0 %v3799_v5  ;;  %v47_v5 = vld [vmem:[%s5930_s1 + $0x30] sm:$0xff] }
  0x26   :  { %v3808_v7 = vcombine.high %v233_v2, %v237_v3  ;;  %v113_v8 = vld [vmem:[%s5930_s1 + $0x240] sm:$0xff]  ;;  %1675 = vmatprep.subr.bf16.mxu1 %v3680_v6  ;;  %v3807_v13 = vcombine.low %v233_v2, %v237_v3  ;;  %v42_v2 = vld [vmem:[%s5930_s1 + $0x8] sm:$0xff] }
  0x27   :  { %v117_v9 = vld [vmem:[%s5930_s1 + $0x260] sm:$0xff]  ;;  %1676 = vmatpush1.bf16.msra.mxu1 %v3679_v12  ;;  %v46_v3 = vld [vmem:[%s5930_s1 + $0x28] sm:$0xff] }
  0x28   :  { %v241_v10 = vld [vmem:[%s5930_s1 + $0x640] sm:$0xff]  ;;  %v3688_v14 = vcombine.high %v113_v8, %v117_v9  ;;  %1728 = vmatprep.subr.bf16.mxu0 %v3808_v7  ;;  %v3687_v20 = vcombine.low %v113_v8, %v117_v9  ;;  %v3618_v8 = vcombine.high %v42_v2, %v46_v3  ;;  %v3620_v9 = vcombine.high %v43_v4, %v47_v5 }
  0x29   :  { %v245_v11 = vld [vmem:[%s5930_s1 + $0x660] sm:$0xff]  ;;  %1729 = vmatpush1.bf16.msra.mxu0 %v3807_v13  ;;  %v51_v13 = vld [vmem:[%s5930_s1 + $0x50] sm:$0xff] }
  0x2a   :  { %v3816_v15 = vcombine.high %v241_v10, %v245_v11  ;;  %v121_v16 = vld [vmem:[%s5930_s1 + $0x280] sm:$0xff]  ;;  %1677 = vmatprep.subr.bf16.mxu1 %v3688_v14  ;;  %v3815_v21 = vcombine.low %v241_v10, %v245_v11  ;;  %v50_v10 = vld [vmem:[%s5930_s1 + $0x48] sm:$0xff]  ;;  %v55_v14 = vld [vmem:[%s5930_s1 + $0x70] sm:$0xff] }
  0x2b   :  { %v125_v17 = vld [vmem:[%s5930_s1 + $0x2a0] sm:$0xff]  ;;  %1678 = vmatpush1.bf16.msra.mxu1 %v3687_v20  ;;  %v54_v11 = vld [vmem:[%s5930_s1 + $0x68] sm:$0xff] }
  0x2c   :  { %v249_v18 = vld [vmem:[%s5930_s1 + $0x680] sm:$0xff]  ;;  %v3696_v22 = vcombine.high %v121_v16, %v125_v17  ;;  %1730 = vmatprep.subr.bf16.mxu0 %v3816_v15  ;;  %v3695_v28 = vcombine.low %v121_v16, %v125_v17  ;;  %v3617_v15 = vcombine.low %v42_v2, %v46_v3  ;;  %v4171_v16 = vld [vmem:[%s5931_s0 + $0x8] ss:$16 sps:$4 sm:$0xff]   ;;  %v3619_v17 = vcombine.low %v43_v4, %v47_v5  ;;  %v99_v3 = vld [vmem:[%s5930_s1 + $0x1d0] sm:$0xff] }
  0x2d   :  { %v253_v19 = vld [vmem:[%s5930_s1 + $0x6a0] sm:$0xff]  ;;  %1731 = vmatpush1.bf16.msra.mxu0 %v3815_v21  ;;  %v58_v20 = vld [vmem:[%s5930_s1 + $0x88] sm:$0xff]  ;;  %v103_v4 = vld [vmem:[%s5930_s1 + $0x1f0] sm:$0xff] }
  0x2e   :  { %v3824_v23 = vcombine.high %v249_v18, %v253_v19  ;;  %v129_v24 = vld [vmem:[%s5930_s1 + $0x2c0] sm:$0xff]  ;;  %1679 = vmatprep.subr.bf16.mxu1 %v3696_v22  ;;  %v3823_v29 = vcombine.low %v249_v18, %v253_v19  ;;  %v3626_v18 = vcombine.high %v50_v10, %v54_v11  ;;  %v3628_v19 = vcombine.high %v51_v13, %v55_v14  ;;  %v62_v21 = vld [vmem:[%s5930_s1 + $0xa8] sm:$0xff] }
  0x2f   :  { %v133_v25 = vld [vmem:[%s5930_s1 + $0x2e0] sm:$0xff]  ;;  %1680 = vmatpush1.bf16.msra.mxu1 %v3695_v28  ;;  %v3634_v28 = vcombine.high %v58_v20, %v62_v21  ;;  %v102_v2 = vld [vmem:[%s5930_s1 + $0x1e8] sm:$0xff] }
  0x30   :  { %v257_v26 = vld [vmem:[%s5930_s1 + $0x6c0] sm:$0xff]  ;;  %v3704_v30 = vcombine.high %v129_v24, %v133_v25  ;;  %1732 = vmatprep.subr.bf16.mxu0 %v3824_v23  ;;  %v3703_v36 = vcombine.low %v129_v24, %v133_v25  ;;  %v59_v23 = vld [vmem:[%s5930_s1 + $0x90] sm:$0xff]  ;;  %v4175_v25 = vld [vmem:[%s5931_s0 + $0x2c] ss:$16 sps:$4 sm:$0xff]  }
  0x31   :  { %v261_v27 = vld [vmem:[%s5930_s1 + $0x6e0] sm:$0xff]  ;;  %1733 = vmatpush1.bf16.msra.mxu0 %v3823_v29  ;;  %v63_v24 = vld [vmem:[%s5930_s1 + $0xb0] sm:$0xff] }
  0x32   :  { %v3832_v31 = vcombine.high %v257_v26, %v261_v27  ;;  %v137_v32 = vld [vmem:[%s5930_s1 + $0x300] sm:$0xff]  ;;  %1681 = vmatprep.subr.bf16.mxu1 %v3704_v30  ;;  %v3831_v37 = vcombine.low %v257_v26, %v261_v27  ;;  %v3625_v26 = vcombine.low %v50_v10, %v54_v11  ;;  %v3627_v27 = vcombine.low %v51_v13, %v55_v14  ;;  %v66_v30 = vld [vmem:[%s5930_s1 + $0xc8] sm:$0xff]  ;;  %v107_v11 = vld [vmem:[%s5930_s1 + $0x210] sm:$0xff] }
  0x33   :  { %v141_v33 = vld [vmem:[%s5930_s1 + $0x320] sm:$0xff]  ;;  %1682 = vmatpush1.bf16.msra.mxu1 %v3703_v36  ;;  %v3636_v29 = vcombine.high %v59_v23, %v63_v24  ;;  %v4177_v36 = vld [vmem:[%s5931_s0 + $0x28] ss:$16 sps:$4 sm:$0xff]   ;;  %v111_v13 = vld [vmem:[%s5930_s1 + $0x230] sm:$0xff] }
  0x34   :  { %v265_v34 = vld [vmem:[%s5930_s1 + $0x700] sm:$0xff]  ;;  %v3712_v38 = vcombine.high %v137_v32, %v141_v33  ;;  %1734 = vmatprep.subr.bf16.mxu0 %v3832_v31  ;;  %v3711_v44 = vcombine.low %v137_v32, %v141_v33  ;;  %v70_v31 = vld [vmem:[%s5930_s1 + $0xe8] sm:$0xff]  ;;  %v67_v32 = vld [vmem:[%s5930_s1 + $0xd0] sm:$0xff] }
  0x35   :  { %v269_v35 = vld [vmem:[%s5930_s1 + $0x720] sm:$0xff]  ;;  %1735 = vmatpush1.bf16.msra.mxu0 %v3831_v37  ;;  %v71_v33 = vld [vmem:[%s5930_s1 + $0xf0] sm:$0xff]  ;;  %v3635_v37 = vcombine.low %v59_v23, %v63_v24  ;;  %v110_v10 = vld [vmem:[%s5930_s1 + $0x228] sm:$0xff]  ;;  %v3683_v24 = vcombine.low %v107_v11, %v111_v13 }
  0x36   :  { %v3840_v39 = vcombine.high %v265_v34, %v269_v35  ;;  %v145_v40 = vld [vmem:[%s5930_s1 + $0x340] sm:$0xff]  ;;  %1683 = vmatprep.subr.bf16.mxu1 %v3712_v38  ;;  %v3839_v45 = vcombine.low %v265_v34, %v269_v35  ;;  %v3633_v35 = vcombine.low %v58_v20, %v62_v21  ;;  %v3642_v38 = vcombine.high %v66_v30, %v70_v31  ;;  %v115_v20 = vld [vmem:[%s5930_s1 + $0x250] sm:$0xff] }
  0x37   :  { %v149_v41 = vld [vmem:[%s5930_s1 + $0x360] sm:$0xff]  ;;  %1684 = vmatpush1.bf16.msra.mxu1 %v3711_v44  ;;  %v3641_v44 = vcombine.low %v66_v30, %v70_v31  ;;  %v119_v21 = vld [vmem:[%s5930_s1 + $0x270] sm:$0xff] }
  0x38   :  { %v273_v42 = vld [vmem:[%s5930_s1 + $0x740] sm:$0xff]  ;;  %v3720_v46 = vcombine.high %v145_v40, %v149_v41  ;;  %1736 = vmatprep.subr.bf16.mxu0 %v3840_v39  ;;  %v3719_v52 = vcombine.low %v145_v40, %v149_v41  ;;  %v3644_v39 = vcombine.high %v67_v32, %v71_v33  ;;  %v74_v40 = vld [vmem:[%s5930_s1 + $0x108] sm:$0xff]  ;;  %v127_v30 = vld [vmem:[%s5930_s1 + $0x2b0] sm:$0xff] }
  0x39   :  { %v277_v43 = vld [vmem:[%s5930_s1 + $0x760] sm:$0xff]  ;;  %1737 = vmatpush1.bf16.msra.mxu0 %v3839_v45  ;;  %v78_v41 = vld [vmem:[%s5930_s1 + $0x128] sm:$0xff]  ;;  %v3643_v45 = vcombine.low %v67_v32, %v71_v33 }
  0x3a   :  { %v3848_v47 = vcombine.high %v273_v42, %v277_v43  ;;  %v153_v48 = vld [vmem:[%s5930_s1 + $0x380] sm:$0xff]  ;;  %1685 = vmatprep.subr.bf16.mxu1 %v3720_v46  ;;  %v3847_v53 = vcombine.low %v273_v42, %v277_v43  ;;  %v75_v42 = vld [vmem:[%s5930_s1 + $0x110] sm:$0xff]  ;;  %v3650_v46 = vcombine.high %v74_v40, %v78_v41  ;;  %v130_v32 = vld [vmem:[%s5930_s1 + $0x2c8] sm:$0xff] }
  0x3b   :  { %v157_v49 = vld [vmem:[%s5930_s1 + $0x3a0] sm:$0xff]  ;;  %1686 = vmatpush1.bf16.msra.mxu1 %v3719_v52  ;;  %v79_v43 = vld [vmem:[%s5930_s1 + $0x130] sm:$0xff]  ;;  %v3649_v52 = vcombine.low %v74_v40, %v78_v41  ;;  %v134_v33 = vld [vmem:[%s5930_s1 + $0x2e8] sm:$0xff] }
  0x3c   :  { %v281_v50 = vld [vmem:[%s5930_s1 + $0x780] sm:$0xff]  ;;  %v3728_v54 = vcombine.high %v153_v48, %v157_v49  ;;  %1738 = vmatprep.subr.bf16.mxu0 %v3848_v47  ;;  %v3727_v62 = vcombine.low %v153_v48, %v157_v49  ;;  %v3652_v47 = vcombine.high %v75_v42, %v79_v43  ;;  %v82_v48 = vld [vmem:[%s5930_s1 + $0x148] sm:$0xff] }
  0x3d   :  { %v285_v51 = vld [vmem:[%s5930_s1 + $0x7a0] sm:$0xff]  ;;  %1739 = vmatpush1.bf16.msra.mxu0 %v3847_v53  ;;  %v86_v49 = vld [vmem:[%s5930_s1 + $0x168] sm:$0xff]  ;;  %v3651_v53 = vcombine.low %v75_v42, %v79_v43 }
  0x3e   :  { %v3856_v55 = vcombine.high %v281_v50, %v285_v51  ;;  %v161_v56 = vld [vmem:[%s5930_s1 + $0x3c0] sm:$0xff]  ;;  %1687 = vmatprep.subr.bf16.mxu1 %v3728_v54  ;;  %v3855_v63 = vcombine.low %v281_v50, %v285_v51  ;;  %v83_v50 = vld [vmem:[%s5930_s1 + $0x150] sm:$0xff]  ;;  %v3658_v54 = vcombine.high %v82_v48, %v86_v49  ;;  %v138_v41 = vld [vmem:[%s5930_s1 + $0x308] sm:$0xff] }
  0x3f   :  { %v165_v58 = vld [vmem:[%s5930_s1 + $0x3e0] sm:$0xff]  ;;  %1688 = vmatpush1.bf16.msra.mxu1 %v3727_v62  ;;  %v87_v51 = vld [vmem:[%s5930_s1 + $0x170] sm:$0xff]  ;;  %v142_v42 = vld [vmem:[%s5930_s1 + $0x328] sm:$0xff] }
  0x40   :  { %v289_v60 = vld [vmem:[%s5930_s1 + $0x7c0] sm:$0xff]  ;;  %v3736_v0 = vcombine.high %v161_v56, %v165_v58  ;;  %1740 = vmatprep.subr.bf16.mxu0 %v3856_v55  ;;  %v3735_v6 = vcombine.low %v161_v56, %v165_v58  ;;  %v3660_v55 = vcombine.high %v83_v50, %v87_v51  ;;  %v90_v56 = vld [vmem:[%s5930_s1 + $0x188] sm:$0xff]  ;;  %v3659_v62 = vcombine.low %v83_v50, %v87_v51 }
  0x41   :  { %v293_v61 = vld [vmem:[%s5930_s1 + $0x7e0] sm:$0xff]  ;;  %1741 = vmatpush1.bf16.msra.mxu0 %v3855_v63  ;;  %v94_v58 = vld [vmem:[%s5930_s1 + $0x1a8] sm:$0xff] }
  0x42   :  { %v3864_v1 = vcombine.high %v289_v60, %v293_v61  ;;  %1689 = vmatprep.subr.bf16.mxu1 %v3736_v0  ;;  %v3863_v7 = vcombine.low %v289_v60, %v293_v61  ;;  %v4717_v12 = vld [vmem:[%s5931_s0] ss:$16 sps:$4 sm:$0xff]   ;;  %v4737_v22 = vld [vmem:[%s5931_s0 + $0x24] ss:$16 sps:$4 sm:$0xff]   ;;  %v3657_v61 = vcombine.low %v82_v48, %v86_v49  ;;  %v3666_v63 = vcombine.high %v90_v56, %v94_v58  ;;  %v146_v49 = vld [vmem:[%s5930_s1 + $0x348] sm:$0xff] }
  0x43   :  { %1690 = vmatpush1.bf16.msra.mxu1 %v3735_v6  ;;  %v4765_v34 = vld [vmem:[%s5931_s0 + $0x20] ss:$16 sps:$4 sm:$0xff]   ;;  %v3665_v5 = vcombine.low %v90_v56, %v94_v58  ;;  %v3705_v48 = vcombine.low %v130_v32, %v134_v33  ;;  %v150_v50 = vld [vmem:[%s5930_s1 + $0x368] sm:$0xff]  ;;  %v3713_v56 = vcombine.low %v138_v41, %v142_v42 }
  0x44   :  { %1742 = vmatprep.subr.bf16.mxu0 %v3864_v1  ;;  %1765 = vmatprep.subr.bf16.mxu1 %v3618_v8  ;;  %v95_v60 = vld [vmem:[%s5930_s1 + $0x1b0] sm:$0xff]  ;;  %v98_v1 = vld [vmem:[%s5930_s1 + $0x1c8] sm:$0xff]  ;;  %v3676_v8 = vcombine.high %v99_v3, %v103_v4 }
  0x45   :  { %1743 = vmatpush1.bf16.msra.mxu0 %v3863_v7  ;;  %v3674_v7 = vcombine.high %v98_v1, %v102_v2  ;;  %v3673_v14 = vcombine.low %v98_v1, %v102_v2  ;;  %v154_v58 = vld [vmem:[%s5930_s1 + $0x388] sm:$0xff]  ;;  %v3721_v1 = vcombine.low %v146_v49, %v150_v50 }
  0x46   :  { %1871 = vmatprep.subr.bf16.mxu0 %v3620_v9  ;;  %1692 = vmatmul.mubr.bf16.vlgmr.msra.gmra.mrb[0].mxu1 %v4717_v12  ;;  %v106_v9 = vld [vmem:[%s5930_s1 + $0x208] sm:$0xff] }
  0x47   :  { %1766 = vmatpush1.bf16.msra.mxu1 %v3617_v15  ;;  %1701 = vmatprep.mubr.bf16.mxu1 %v4737_v22  ;;  %v3675_v15 = vcombine.low %v99_v3, %v103_v4  ;;  %v3681_v23 = vcombine.low %v106_v9, %v110_v10  ;;  %v162_v2 = vld [vmem:[%s5930_s1 + $0x3c8] sm:$0xff] }
  0x48   :  { %1745 = vmatmul.mubr.bf16.vlgmr.msra.gmra.mrb[0].mxu0 %v4171_v16  ;;  %1767 = vmatprep.subr.bf16.mxu1 %v3626_v18  ;;  %v3682_v16 = vcombine.high %v106_v9, %v110_v10  ;;  %v114_v18 = vld [vmem:[%s5930_s1 + $0x248] sm:$0xff] }
  0x49   :  { %1872 = vmatpush1.bf16.msra.mxu0 %v3619_v17  ;;  %1754 = vmatprep.mubr.bf16.mxu0 %v4175_v25  ;;  %v3684_v17 = vcombine.high %v107_v11, %v111_v13  ;;  %v166_v3 = vld [vmem:[%s5930_s1 + $0x3e8] sm:$0xff] }
  0x4a   :  { %1873 = vmatprep.subr.bf16.mxu0 %v3628_v19  ;;  %v118_v19 = vld [vmem:[%s5930_s1 + $0x268] sm:$0xff] }
  0x4b   :  { %1768 = vmatpush1.bf16.msra.mxu1 %v3625_v26  ;;  %v3690_v25 = vcombine.high %v114_v18, %v118_v19  ;;  %v122_v26 = vld [vmem:[%s5930_s1 + $0x288] sm:$0xff]  ;;  %v3689_v31 = vcombine.low %v114_v18, %v118_v19  ;;  %v3737_v18 = vcombine.low %v162_v2, %v166_v3 }
  0x4c   :  { %1769 = vmatprep.subr.bf16.mxu1 %v3634_v28  ;;  %v3692_v28 = vcombine.high %v115_v20, %v119_v21  ;;  %v170_v10 = vld [vmem:[%s5930_s1 + $0x408] sm:$0xff] }
  0x4d   :  { %1874 = vmatpush1.bf16.msra.mxu0 %v3627_v27  ;;  %v126_v27 = vld [vmem:[%s5930_s1 + $0x2a8] sm:$0xff] }
  0x4e   :  { %1875 = vmatprep.subr.bf16.mxu0 %v3636_v29  ;;  %1702 = vmatmul.mubr.bf16.gmra.mrb[4].mxu1 %v4765_v34  ;;  %v123_v29 = vld [vmem:[%s5930_s1 + $0x290] sm:$0xff]  ;;  %v3697_v40 = vcombine.low %v122_v26, %v126_v27  ;;  %v174_v11 = vld [vmem:[%s5930_s1 + $0x428] sm:$0xff] }
  0x4f   :  { %1770 = vmatpush1.bf16.msra.mxu1 %v3633_v35  ;;  %1797 = vmatprep.mubr.bf16.mxu1 %v4588_v57  ;;  %v3691_v35 = vcombine.low %v115_v20, %v119_v21  ;;  %v3699_v43 = vcombine.low %v123_v29, %v127_v30  ;;  %v178_v19 = vld [vmem:[%s5930_s1 + $0x448] sm:$0xff] }
  0x50   :  { %1755 = vmatmul.mubr.bf16.gmra.mrb[4].mxu0 %v4177_v36  ;;  %1771 = vmatprep.subr.bf16.mxu1 %v3642_v38  ;;  %v3698_v36 = vcombine.high %v122_v26, %v126_v27  ;;  %v135_v38 = vld [vmem:[%s5930_s1 + $0x2f0] sm:$0xff]  ;;  %v182_v20 = vld [vmem:[%s5930_s1 + $0x468] sm:$0xff]  ;;  %v3745_v27 = vcombine.low %v170_v10, %v174_v11 }
  0x51   :  { %1876 = vmatpush1.bf16.msra.mxu0 %v3635_v37  ;;  %1903 = vmatprep.mubr.bf16.mxu0 %v4588_v57  ;;  %v91_v57 = vld [vmem:[%s5930_s1 + $0x190] sm:$0xff] }
  0x52   :  { %1877 = vmatprep.subr.bf16.mxu0 %v3644_v39  ;;  %v3668_v0 = vcombine.high %v91_v57, %v95_v60  ;;  %v3667_v6 = vcombine.low %v91_v57, %v95_v60  ;;  %v131_v37 = vld [vmem:[%s5930_s1 + $0x2d0] sm:$0xff]  ;;  %v3700_v39 = vcombine.high %v123_v29, %v127_v30  ;;  %v158_v57 = vld [vmem:[%s5930_s1 + $0x3a8] sm:$0xff] }
  0x53   :  { %1772 = vmatpush1.bf16.msra.mxu1 %v3641_v44  ;;  %v3706_v44 = vcombine.high %v130_v32, %v134_v33  ;;  %v3707_v51 = vcombine.low %v131_v37, %v135_v38  ;;  %v3729_v9 = vcombine.low %v154_v58, %v158_v57  ;;  %v190_v29 = vld [vmem:[%s5930_s1 + $0x4a8] sm:$0xff]  ;;  %v187_v32 = vld [vmem:[%s5930_s1 + $0x490] sm:$0xff] }
  0x54   :  { %1773 = vmatprep.subr.bf16.mxu1 %v3650_v46  ;;  %v143_v46 = vld [vmem:[%s5930_s1 + $0x330] sm:$0xff] }
  0x55   :  { %1878 = vmatpush1.bf16.msra.mxu0 %v3643_v45  ;;  %v139_v45 = vld [vmem:[%s5930_s1 + $0x310] sm:$0xff] }
  0x56   :  { %1879 = vmatprep.subr.bf16.mxu0 %v3652_v47  ;;  %v3708_v47 = vcombine.high %v131_v37, %v135_v38  ;;  %v3715_v60 = vcombine.low %v139_v45, %v143_v46  ;;  %v191_v33 = vld [vmem:[%s5930_s1 + $0x4b0] sm:$0xff]  ;;  %v194_v37 = vld [vmem:[%s5930_s1 + $0x4c8] sm:$0xff] }
  0x57   :  { %1774 = vmatpush1.bf16.msra.mxu1 %v3649_v52  ;;  %v3714_v52 = vcombine.high %v138_v41, %v142_v42  ;;  %v198_v38 = vld [vmem:[%s5930_s1 + $0x4e8] sm:$0xff]  ;;  %v195_v41 = vld [vmem:[%s5930_s1 + $0x4d0] sm:$0xff]  ;;  %v3764_v42 = vcombine.high %v187_v32, %v191_v33 }
  0x58   :  { %1775 = vmatprep.subr.bf16.mxu1 %v3658_v54  ;;  %v151_v54 = vld [vmem:[%s5930_s1 + $0x370] sm:$0xff] }
  0x59   :  { %1880 = vmatpush1.bf16.msra.mxu0 %v3651_v53  ;;  %v147_v53 = vld [vmem:[%s5930_s1 + $0x350] sm:$0xff] }
  0x5a   :  { %1881 = vmatprep.subr.bf16.mxu0 %v3660_v55  ;;  %v3716_v55 = vcombine.high %v139_v45, %v143_v46  ;;  %v3723_v4 = vcombine.low %v147_v53, %v151_v54  ;;  %v206_v45 = vld [vmem:[%s5930_s1 + $0x528] sm:$0xff]  ;;  %v3763_v46 = vcombine.low %v187_v32, %v191_v33  ;;  %v251_v33 = vld [vmem:[%s5930_s1 + $0x690] sm:$0xff] }
  0x5b   :  { %1776 = vmatpush1.bf16.msra.mxu1 %v3657_v61  ;;  %v3722_v61 = vcombine.high %v146_v49, %v150_v50  ;;  %v3769_v50 = vcombine.low %v194_v37, %v198_v38  ;;  %v254_v32 = vld [vmem:[%s5930_s1 + $0x6a8] sm:$0xff] }
  0x5c   :  { %1777 = vmatprep.subr.bf16.mxu1 %v3666_v63  ;;  %v159_v63 = vld [vmem:[%s5930_s1 + $0x3b0] sm:$0xff] }
  0x5d   :  { %1882 = vmatpush1.bf16.msra.mxu0 %v3659_v62  ;;  %v155_v62 = vld [vmem:[%s5930_s1 + $0x390] sm:$0xff] }
  0x5e   :  { %1883 = vmatprep.subr.bf16.mxu0 %v3668_v0  ;;  %v3724_v0 = vcombine.high %v147_v53, %v151_v54  ;;  %v3731_v13 = vcombine.low %v155_v62, %v159_v63 }
  0x5f   :  { %1778 = vmatpush1.bf16.msra.mxu1 %v3665_v5  ;;  %v3730_v5 = vcombine.high %v154_v58, %v158_v57  ;;  %v218_v57 = vld [vmem:[%s5930_s1 + $0x588] sm:$0xff] }
  0x60   :  { %1779 = vmatprep.subr.bf16.mxu1 %v3674_v7  ;;  %v167_v7 = vld [vmem:[%s5930_s1 + $0x3f0] sm:$0xff] }
  0x61   :  { %1884 = vmatpush1.bf16.msra.mxu0 %v3667_v6  ;;  %v163_v6 = vld [vmem:[%s5930_s1 + $0x3d0] sm:$0xff] }
  0x62   :  { %1885 = vmatprep.subr.bf16.mxu0 %v3676_v8  ;;  %v3732_v8 = vcombine.high %v155_v62, %v159_v63  ;;  %v3739_v21 = vcombine.low %v163_v6, %v167_v7  ;;  %v219_v63 = vld [vmem:[%s5930_s1 + $0x590] sm:$0xff] }
  0x63   :  { %1780 = vmatpush1.bf16.msra.mxu1 %v3673_v14  ;;  %v3738_v14 = vcombine.high %v162_v2, %v166_v3 }
  0x64   :  { %1781 = vmatprep.subr.bf16.mxu1 %v3682_v16  ;;  %v175_v16 = vld [vmem:[%s5930_s1 + $0x430] sm:$0xff] }
  0x65   :  { %1886 = vmatpush1.bf16.msra.mxu0 %v3675_v15  ;;  %v171_v15 = vld [vmem:[%s5930_s1 + $0x410] sm:$0xff] }
  0x66   :  { %1887 = vmatprep.subr.bf16.mxu0 %v3684_v17  ;;  %v3740_v17 = vcombine.high %v163_v6, %v167_v7  ;;  %v3748_v26 = vcombine.high %v171_v15, %v175_v16  ;;  %v3747_v30 = vcombine.low %v171_v15, %v175_v16  ;;  %v227_v7 = vld [vmem:[%s5930_s1 + $0x5d0] sm:$0xff] }
  0x67   :  { %1782 = vmatpush1.bf16.msra.mxu1 %v3681_v23  ;;  %v3746_v23 = vcombine.high %v170_v10, %v174_v11  ;;  %v235_v16 = vld [vmem:[%s5930_s1 + $0x610] sm:$0xff] }
  0x68   :  { %1783 = vmatprep.subr.bf16.mxu1 %v3690_v25  ;;  %v183_v25 = vld [vmem:[%s5930_s1 + $0x470] sm:$0xff] }
  0x69   :  { %1888 = vmatpush1.bf16.msra.mxu0 %v3683_v24  ;;  %v179_v24 = vld [vmem:[%s5930_s1 + $0x450] sm:$0xff] }
  0x6a   :  { %1889 = vmatprep.subr.bf16.mxu0 %v3692_v28  ;;  %v186_v28 = vld [vmem:[%s5930_s1 + $0x488] sm:$0xff] }
  0x6b   :  { %1784 = vmatpush1.bf16.msra.mxu1 %v3689_v31  ;;  %v3754_v31 = vcombine.high %v178_v19, %v182_v20 }
  0x6c   :  { %1785 = vmatprep.subr.bf16.mxu1 %v3698_v36  ;;  %v3753_v36 = vcombine.low %v178_v19, %v182_v20 }
  0x6d   :  { %1890 = vmatpush1.bf16.msra.mxu0 %v3691_v35  ;;  %v3756_v35 = vcombine.high %v179_v24, %v183_v25 }
  0x6e   :  { %1891 = vmatprep.subr.bf16.mxu0 %v3700_v39  ;;  %v3755_v39 = vcombine.low %v179_v24, %v183_v25  ;;  %v243_v25 = vld [vmem:[%s5930_s1 + $0x650] sm:$0xff] }
  0x6f   :  { %1786 = vmatpush1.bf16.msra.mxu1 %v3697_v40  ;;  %v3762_v40 = vcombine.high %v186_v28, %v190_v29 }
  0x70   :  { %1787 = vmatprep.subr.bf16.mxu1 %v3706_v44  ;;  %v202_v44 = vld [vmem:[%s5930_s1 + $0x508] sm:$0xff] }
  0x71   :  { %1892 = vmatpush1.bf16.msra.mxu0 %v3699_v43  ;;  %v3761_v43 = vcombine.low %v186_v28, %v190_v29  ;;  %v3778_v54 = vcombine.high %v202_v44, %v206_v45 }
  0x72   :  { %1893 = vmatprep.subr.bf16.mxu0 %v3708_v47  ;;  %v3770_v47 = vcombine.high %v194_v37, %v198_v38 }
  0x73   :  { %1788 = vmatpush1.bf16.msra.mxu1 %v3705_v48  ;;  %v203_v48 = vld [vmem:[%s5930_s1 + $0x510] sm:$0xff] }
  0x74   :  { %1789 = vmatprep.subr.bf16.mxu1 %v3714_v52  ;;  %v214_v52 = vld [vmem:[%s5930_s1 + $0x568] sm:$0xff] }
  0x75   :  { %1894 = vmatpush1.bf16.msra.mxu0 %v3707_v51  ;;  %v210_v51 = vld [vmem:[%s5930_s1 + $0x548] sm:$0xff] }
  0x76   :  { %1895 = vmatprep.subr.bf16.mxu0 %v3716_v55  ;;  %v211_v55 = vld [vmem:[%s5930_s1 + $0x550] sm:$0xff]  ;;  %v3786_v62 = vcombine.high %v210_v51, %v214_v52 }
  0x77   :  { %1790 = vmatpush1.bf16.msra.mxu1 %v3713_v56  ;;  %v215_v56 = vld [vmem:[%s5930_s1 + $0x570] sm:$0xff] }
  0x78   :  { %1791 = vmatprep.subr.bf16.mxu1 %v3722_v61  ;;  %v3787_v2 = vcombine.low %v211_v55, %v215_v56 }
  0x79   :  { %1896 = vmatpush1.bf16.msra.mxu0 %v3715_v60  ;;  %v222_v60 = vld [vmem:[%s5930_s1 + $0x5a8] sm:$0xff] }
  0x7a   :  { %1897 = vmatprep.subr.bf16.mxu0 %v3724_v0  ;;  %v3788_v0 = vcombine.high %v211_v55, %v215_v56  ;;  %v3794_v3 = vcombine.high %v218_v57, %v222_v60  ;;  %v278_v55 = vld [vmem:[%s5930_s1 + $0x768] sm:$0xff]  ;;  %v275_v56 = vld [vmem:[%s5930_s1 + $0x750] sm:$0xff] }
  0x7b   :  { %1792 = vmatpush1.bf16.msra.mxu1 %v3721_v1  ;;  %v3785_v1 = vcombine.low %v210_v51, %v214_v52 }
  0x7c   :  { %1793 = vmatprep.subr.bf16.mxu1 %v3730_v5  ;;  %v230_v5 = vld [vmem:[%s5930_s1 + $0x5e8] sm:$0xff] }
  0x7d   :  { %1898 = vmatpush1.bf16.msra.mxu0 %v3723_v4  ;;  %v226_v4 = vld [vmem:[%s5930_s1 + $0x5c8] sm:$0xff] }
  0x7e   :  { %1899 = vmatprep.subr.bf16.mxu0 %v3732_v8  ;;  %v231_v8 = vld [vmem:[%s5930_s1 + $0x5f0] sm:$0xff]  ;;  %v3802_v11 = vcombine.high %v226_v4, %v230_v5 }
  0x7f   :  { %1794 = vmatpush1.bf16.msra.mxu1 %v3729_v9  ;;  %v3793_v9 = vcombine.low %v218_v57, %v222_v60  ;;  %v3804_v15 = vcombine.high %v227_v7, %v231_v8  ;;  %v3803_v19 = vcombine.low %v227_v7, %v231_v8  ;;  %v291_v7 = vld [vmem:[%s5930_s1 + $0x7d0] sm:$0xff] }
  0x80   :  { %1795 = vmatprep.subr.bf16.mxu1 %v3738_v14  ;;  %v238_v14 = vld [vmem:[%s5930_s1 + $0x628] sm:$0xff]  ;;  %v295_v8 = vld [vmem:[%s5930_s1 + $0x7f0] sm:$0xff] }
  0x81   :  { %1900 = vmatpush1.bf16.msra.mxu0 %v3731_v13  ;;  %v234_v13 = vld [vmem:[%s5930_s1 + $0x608] sm:$0xff] }
  0x82   :  { %1901 = vmatprep.subr.bf16.mxu0 %v3740_v17  ;;  %v239_v17 = vld [vmem:[%s5930_s1 + $0x630] sm:$0xff]  ;;  %v3810_v20 = vcombine.high %v234_v13, %v238_v14 }
  0x83   :  { %1796 = vmatpush1.bf16.msra.mxu1 %v3737_v18  ;;  %v3801_v18 = vcombine.low %v226_v4, %v230_v5  ;;  %v3812_v24 = vcombine.high %v235_v16, %v239_v17  ;;  %v3811_v28 = vcombine.low %v235_v16, %v239_v17  ;;  %v290_v5 = vld [vmem:[%s5930_s1 + $0x7c8] sm:$0xff]  ;;  %v3867_v17 = vcombine.low %v291_v7, %v295_v8 }
  0x84   :  { %1818 = vmatprep.subr.bf16.mxu1 %v3746_v23  ;;  %v246_v23 = vld [vmem:[%s5930_s1 + $0x668] sm:$0xff] }
  0x85   :  { %1902 = vmatpush1.bf16.msra.mxu0 %v3739_v21  ;;  %v242_v21 = vld [vmem:[%s5930_s1 + $0x648] sm:$0xff] }
  0x86   :  { %1924 = vmatprep.subr.bf16.mxu0 %v3748_v26  ;;  %1798 = vmatmul.mubr.bf16.vlgmr.msra.gmra.mrb[8].mxu1 %v4717_v12  ;;  %v247_v26 = vld [vmem:[%s5930_s1 + $0x670] sm:$0xff]  ;;  %v3818_v29 = vcombine.high %v242_v21, %v246_v23 }
  0x87   :  { %1819 = vmatpush1.bf16.msra.mxu1 %v3745_v27  ;;  %1807 = vmatprep.mubr.bf16.mxu1 %v4737_v22  ;;  %v3809_v27 = vcombine.low %v234_v13, %v238_v14  ;;  %v3819_v37 = vcombine.low %v243_v25, %v247_v26  ;;  %v3868_v13 = vcombine.high %v291_v7, %v295_v8  ;;  %v44_v14 = vld [vmem:[%s5930_s1 + $0x18] sm:$0xff]  ;;  %v4204_v8 = vld [vmem:[%s5932_s3 + $0x84] ss:$8 sps:$4 sm:$0xff]  }
  0x88   :  { %1904 = vmatmul.mubr.bf16.vlgmr.msra.gmra.mrb[8].mxu0 %v4717_v12  ;;  %1820 = vmatprep.subr.bf16.mxu1 %v3754_v31  ;;  %v199_v12 = vld [vmem:[%s5930_s1 + $0x4f0] sm:$0xff]  ;;  %v250_v31 = vld [vmem:[%s5930_s1 + $0x688] sm:$0xff] }
  0x89   :  { %1925 = vmatpush1.bf16.msra.mxu0 %v3747_v30  ;;  %1913 = vmatprep.mubr.bf16.mxu0 %v4737_v22  ;;  %v207_v22 = vld [vmem:[%s5930_s1 + $0x530] sm:$0xff]  ;;  %v3772_v49 = vcombine.high %v195_v41, %v199_v12  ;;  %v3771_v53 = vcombine.low %v195_v41, %v199_v12  ;;  %v3820_v30 = vcombine.high %v243_v25, %v247_v26  ;;  %v262_v41 = vld [vmem:[%s5930_s1 + $0x6e8] sm:$0xff]  ;;  %v60_v25 = vld [vmem:[%s5930_s1 + $0x98] sm:$0xff] }
  0x8a   :  { %1926 = vmatprep.subr.bf16.mxu0 %v3756_v35  ;;  %v3780_v58 = vcombine.high %v203_v48, %v207_v22  ;;  %v3779_v61 = vcombine.low %v203_v48, %v207_v22  ;;  %v255_v35 = vld [vmem:[%s5930_s1 + $0x6b0] sm:$0xff]  ;;  %v3826_v38 = vcombine.high %v250_v31, %v254_v32  ;;  %v270_v48 = vld [vmem:[%s5930_s1 + $0x728] sm:$0xff]  ;;  %v64_v26 = vld [vmem:[%s5930_s1 + $0xb8] sm:$0xff] }
  0x8b   :  { %1821 = vmatpush1.bf16.msra.mxu1 %v3753_v36  ;;  %v3817_v36 = vcombine.low %v242_v21, %v246_v23  ;;  %v259_v12 = vld [vmem:[%s5930_s1 + $0x6d0] sm:$0xff]  ;;  %v4180_v21 = vld [vmem:[%s5932_s3 + $0x4] ss:$8 sps:$4 sm:$0xff]  }
  0x8c   :  { %1822 = vmatprep.subr.bf16.mxu1 %v3762_v40  ;;  %v258_v40 = vld [vmem:[%s5930_s1 + $0x6c8] sm:$0xff]  ;;  %v267_v22 = vld [vmem:[%s5930_s1 + $0x710] sm:$0xff] }
  0x8d   :  { %1927 = vmatpush1.bf16.msra.mxu0 %v3755_v39  ;;  %v3828_v39 = vcombine.high %v251_v33, %v255_v35  ;;  %v4199_v7 = vld [vmem:[%s5932_s3 + $0x70] ss:$8 sps:$4 sm:$0xff]  }
  0x8e   :  { %1928 = vmatprep.subr.bf16.mxu0 %v3764_v42  ;;  %1808 = vmatmul.mubr.bf16.gmra.mrb[12].mxu1 %v4765_v34  ;;  %v263_v42 = vld [vmem:[%s5930_s1 + $0x6f0] sm:$0xff] }
  0x8f   :  { %1823 = vmatpush1.bf16.msra.mxu1 %v3761_v43  ;;  %1850 = vmatprep.mubr.bf16.mxu1 %v4596_v59  ;;  %v3825_v43 = vcombine.low %v250_v31, %v254_v32  ;;  %v3835_v51 = vcombine.low %v259_v12, %v263_v42  ;;  %v5154_v31 = vld [vmem:[%s5931_s0 + $0x2c] ss:$16 sps:$4 sm:$0xff]   ;;  %v3638_v32 = vcombine.high %v60_v25, %v64_v26 }
  0x90   :  { %1914 = vmatmul.mubr.bf16.gmra.mrb[12].mxu0 %v4765_v34  ;;  %1824 = vmatprep.subr.bf16.mxu1 %v3770_v47  ;;  %v3777_v34 = vcombine.low %v202_v44, %v206_v45  ;;  %v3827_v44 = vcombine.low %v251_v33, %v255_v35  ;;  %v3834_v45 = vcombine.high %v258_v40, %v262_v41  ;;  %v266_v47 = vld [vmem:[%s5930_s1 + $0x708] sm:$0xff]  ;;  %v68_v33 = vld [vmem:[%s5930_s1 + $0xd8] sm:$0xff] }
  0x91   :  { %1929 = vmatpush1.bf16.msra.mxu0 %v3763_v46  ;;  %1956 = vmatprep.mubr.bf16.mxu0 %v4596_v59  ;;  %v223_v59 = vld [vmem:[%s5930_s1 + $0x5b0] sm:$0xff]  ;;  %v3836_v46 = vcombine.high %v259_v12, %v263_v42  ;;  %v3842_v52 = vcombine.high %v266_v47, %v270_v48  ;;  %v72_v35 = vld [vmem:[%s5930_s1 + $0xf8] sm:$0xff]  ;;  %v4184_v12 = vld [vmem:[%s5932_s3 + $0x20] ss:$8 sps:$4 sm:$0xff]  }
  0x92   :  { %1930 = vmatprep.subr.bf16.mxu0 %v3772_v49  ;;  %v3796_v6 = vcombine.high %v219_v63, %v223_v59  ;;  %v3795_v10 = vcombine.low %v219_v63, %v223_v59  ;;  %v271_v49 = vld [vmem:[%s5930_s1 + $0x730] sm:$0xff]  ;;  %v286_v63 = vld [vmem:[%s5930_s1 + $0x7a8] sm:$0xff] }
  0x93   :  { %1825 = vmatpush1.bf16.msra.mxu1 %v3769_v50  ;;  %v3833_v50 = vcombine.low %v258_v40, %v262_v41  ;;  %v3843_v57 = vcombine.low %v267_v22, %v271_v49  ;;  %v283_v59 = vld [vmem:[%s5930_s1 + $0x790] sm:$0xff]  ;;  %v76_v40 = vld [vmem:[%s5930_s1 + $0x118] sm:$0xff] }
  0x94   :  { %1826 = vmatprep.subr.bf16.mxu1 %v3778_v54  ;;  %v274_v54 = vld [vmem:[%s5930_s1 + $0x748] sm:$0xff]  ;;  %v80_v41 = vld [vmem:[%s5930_s1 + $0x138] sm:$0xff] }
  0x95   :  { %1931 = vmatpush1.bf16.msra.mxu0 %v3771_v53  ;;  %v3844_v53 = vcombine.high %v267_v22, %v271_v49  ;;  %v3850_v60 = vcombine.high %v274_v54, %v278_v55  ;;  %v5182_v42 = vld [vmem:[%s5931_s0 + $0x28] ss:$16 sps:$4 sm:$0xff]   ;;  %v4192_v49 = vld [vmem:[%s5932_s3 + $0x44] ss:$8 sps:$4 sm:$0xff]  }
  0x96   :  { %1932 = vmatprep.subr.bf16.mxu0 %v3780_v58  ;;  %v279_v58 = vld [vmem:[%s5930_s1 + $0x770] sm:$0xff] }
  0x97   :  { %1827 = vmatpush1.bf16.msra.mxu1 %v3777_v34  ;;  %v3841_v34 = vcombine.low %v266_v47, %v270_v48  ;;  %v84_v47 = vld [vmem:[%s5930_s1 + $0x158] sm:$0xff] }
  0x98   :  { %1828 = vmatprep.subr.bf16.mxu1 %v3786_v62  ;;  %v282_v62 = vld [vmem:[%s5930_s1 + $0x788] sm:$0xff]  ;;  %v88_v48 = vld [vmem:[%s5930_s1 + $0x178] sm:$0xff] }
  0x99   :  { %1933 = vmatpush1.bf16.msra.mxu0 %v3779_v61  ;;  %v3852_v61 = vcombine.high %v275_v56, %v279_v58  ;;  %v4187_v22 = vld [vmem:[%s5932_s3 + $0x30] ss:$8 sps:$4 sm:$0xff]  }
  0x9a   :  { %1934 = vmatprep.subr.bf16.mxu0 %v3788_v0  ;;  %v287_v0 = vld [vmem:[%s5930_s1 + $0x7b0] sm:$0xff] }
  0x9b   :  { %1829 = vmatpush1.bf16.msra.mxu1 %v3785_v1  ;;  %v3849_v1 = vcombine.low %v274_v54, %v278_v55  ;;  %v3860_v4 = vcombine.high %v283_v59, %v287_v0  ;;  %v4190_v54 = vld [vmem:[%s5932_s3 + $0x40] ss:$8 sps:$4 sm:$0xff]   ;;  %v4195_v55 = vld [vmem:[%s5932_s3 + $0x54] ss:$8 sps:$4 sm:$0xff]  }
  0x9c   :  { %1830 = vmatprep.subr.bf16.mxu1 %v3794_v3  ;;  %v3858_v3 = vcombine.high %v282_v62, %v286_v63 }
  0x9d   :  { %1935 = vmatpush1.bf16.msra.mxu0 %v3787_v2  ;;  %v3851_v2 = vcombine.low %v275_v56, %v279_v58  ;;  %v3661_v56 = vcombine.low %v84_v47, %v88_v48 }
  0x9e   :  { %1936 = vmatprep.subr.bf16.mxu0 %v3796_v6  ;;  %v294_v6 = vld [vmem:[%s5930_s1 + $0x7e8] sm:$0xff] }
  0x9f   :  { %1831 = vmatpush1.bf16.msra.mxu1 %v3793_v9  ;;  %v3857_v9 = vcombine.low %v282_v62, %v286_v63  ;;  %v3865_v16 = vcombine.low %v290_v5, %v294_v6 }
  0xa0   :  { %1832 = vmatprep.subr.bf16.mxu1 %v3802_v11  ;;  %v3866_v11 = vcombine.high %v290_v5, %v294_v6  ;;  %v116_v5 = vld [vmem:[%s5930_s1 + $0x258] sm:$0xff] }
  0xa1   :  { %1937 = vmatpush1.bf16.msra.mxu0 %v3795_v10  ;;  %v3859_v10 = vcombine.low %v283_v59, %v287_v0  ;;  %v108_v59 = vld [vmem:[%s5930_s1 + $0x218] sm:$0xff] }
  0xa2   :  { %1938 = vmatprep.subr.bf16.mxu0 %v3804_v15  ;;  %v48_v15 = vld [vmem:[%s5930_s1 + $0x38] sm:$0xff] }
  0xa3   :  { %1833 = vmatpush1.bf16.msra.mxu1 %v3801_v18  ;;  %v3622_v18 = vcombine.high %v44_v14, %v48_v15  ;;  %v3621_v23 = vcombine.low %v44_v14, %v48_v15  ;;  %v112_v0 = vld [vmem:[%s5930_s1 + $0x238] sm:$0xff]  ;;  %v4202_v14 = vld [vmem:[%s5932_s3 + $0x80] ss:$8 sps:$4 sm:$0xff]  }
  0xa4   :  { %1834 = vmatprep.subr.bf16.mxu1 %v3810_v20  ;;  %v56_v20 = vld [vmem:[%s5930_s1 + $0x78] sm:$0xff] }
  0xa5   :  { %1939 = vmatpush1.bf16.msra.mxu0 %v3803_v19  ;;  %v52_v19 = vld [vmem:[%s5930_s1 + $0x58] sm:$0xff] }
  0xa6   :  { %1940 = vmatprep.subr.bf16.mxu0 %v3812_v24  ;;  %v3630_v24 = vcombine.high %v52_v19, %v56_v20  ;;  %v120_v6 = vld [vmem:[%s5930_s1 + $0x278] sm:$0xff] }
  0xa7   :  { %1835 = vmatpush1.bf16.msra.mxu1 %v3809_v27  ;;  %v4178_v27 = vld [vmem:[%s5932_s3] ss:$8 sps:$4 sm:$0xff]   ;;  %v4207_v15 = vld [vmem:[%s5932_s3 + $0x94] ss:$8 sps:$4 sm:$0xff]  }
  0xa8   :  { %1836 = vmatprep.subr.bf16.mxu1 %v3818_v29  ;;  %v4183_v29 = vld [vmem:[%s5932_s3 + $0x14] ss:$8 sps:$4 sm:$0xff]  }
  0xa9   :  { %1941 = vmatpush1.bf16.msra.mxu0 %v3811_v28  ;;  %v5144_v28 = vld [vmem:[%s5931_s0 + $0x8] ss:$16 sps:$4 sm:$0xff]  }
  0xaa   :  { %1942 = vmatprep.subr.bf16.mxu0 %v3820_v30  ;;  %v3629_v30 = vcombine.low %v52_v19, %v56_v20  ;;  %v136_v19 = vld [vmem:[%s5930_s1 + $0x2f8] sm:$0xff] }
  0xab   :  { %1837 = vmatpush1.bf16.msra.mxu1 %v3817_v36  ;;  %v4181_v36 = vld [vmem:[%s5932_s3 + $0x10] ss:$8 sps:$4 sm:$0xff]  }
  0xac   :  { %1838 = vmatprep.subr.bf16.mxu1 %v3826_v38  ;;  %v3637_v38 = vcombine.low %v60_v25, %v64_v26  ;;  %v4205_v20 = vld [vmem:[%s5932_s3 + $0x90] ss:$8 sps:$4 sm:$0xff]  }
  0xad   :  { %1943 = vmatpush1.bf16.msra.mxu0 %v3819_v37  ;;  %v4186_v37 = vld [vmem:[%s5932_s3 + $0x24] ss:$8 sps:$4 sm:$0xff]   ;;  %v140_v25 = vld [vmem:[%s5930_s1 + $0x318] sm:$0xff] }
  0xae   :  { %1944 = vmatprep.subr.bf16.mxu0 %v3828_v39  ;;  %v3646_v39 = vcombine.high %v68_v33, %v72_v35  ;;  %v144_v26 = vld [vmem:[%s5930_s1 + $0x338] sm:$0xff] }
  0xaf   :  { %1839 = vmatpush1.bf16.msra.mxu1 %v3825_v43  ;;  %v4189_v43 = vld [vmem:[%s5932_s3 + $0x34] ss:$8 sps:$4 sm:$0xff]  }
  0xb0   :  { %1840 = vmatprep.subr.bf16.mxu1 %v3834_v45  ;;  %v3654_v45 = vcombine.high %v76_v40, %v80_v41 }
  0xb1   :  { %1945 = vmatpush1.bf16.msra.mxu0 %v3827_v44  ;;  %v3645_v44 = vcombine.low %v68_v33, %v72_v35  ;;  %v148_v33 = vld [vmem:[%s5930_s1 + $0x358] sm:$0xff] }
  0xb2   :  { %1946 = vmatprep.subr.bf16.mxu0 %v3836_v46  ;;  %v4437_v46 = vld [vmem:[%s5931_s0 + $0x4] ss:$16 sps:$4 sm:$0xff]   ;;  %v152_v35 = vld [vmem:[%s5930_s1 + $0x378] sm:$0xff] }
  0xb3   :  { %1841 = vmatpush1.bf16.msra.mxu1 %v3833_v50  ;;  %v3653_v50 = vcombine.low %v76_v40, %v80_v41  ;;  %v156_v40 = vld [vmem:[%s5930_s1 + $0x398] sm:$0xff] }
  0xb4   :  { %1842 = vmatprep.subr.bf16.mxu1 %v3842_v52  ;;  %v92_v52 = vld [vmem:[%s5930_s1 + $0x198] sm:$0xff] }
  0xb5   :  { %1947 = vmatpush1.bf16.msra.mxu0 %v3835_v51  ;;  %v3662_v51 = vcombine.high %v84_v47, %v88_v48  ;;  %v160_v41 = vld [vmem:[%s5930_s1 + $0x3b8] sm:$0xff] }
  0xb6   :  { %1948 = vmatprep.subr.bf16.mxu0 %v3844_v53  ;;  %v96_v53 = vld [vmem:[%s5930_s1 + $0x1b8] sm:$0xff] }
  0xb7   :  { %1843 = vmatpush1.bf16.msra.mxu1 %v3841_v34  ;;  %v3670_v58 = vcombine.high %v92_v52, %v96_v53  ;;  %v100_v34 = vld [vmem:[%s5930_s1 + $0x1d8] sm:$0xff]  ;;  %v3669_v62 = vcombine.low %v92_v52, %v96_v53  ;;  %v4220_v53 = vld [vmem:[%s5932_s3 + $0xe0] ss:$8 sps:$4 sm:$0xff]  }
  0xb8   :  { %1844 = vmatprep.subr.bf16.mxu1 %v3850_v60  ;;  %v4193_v60 = vld [vmem:[%s5932_s3 + $0x50] ss:$8 sps:$4 sm:$0xff]  }
  0xb9   :  { %1949 = vmatpush1.bf16.msra.mxu0 %v3843_v57  ;;  %v104_v57 = vld [vmem:[%s5930_s1 + $0x1f8] sm:$0xff] }
  0xba   :  { %1950 = vmatprep.subr.bf16.mxu0 %v3852_v61  ;;  %v4198_v61 = vld [vmem:[%s5932_s3 + $0x64] ss:$8 sps:$4 sm:$0xff]   ;;  %v3678_v63 = vcombine.high %v100_v34, %v104_v57  ;;  %v168_v47 = vld [vmem:[%s5930_s1 + $0x3f8] sm:$0xff] }
  0xbb   :  { %1845 = vmatpush1.bf16.msra.mxu1 %v3849_v1  ;;  %v4196_v1 = vld [vmem:[%s5932_s3 + $0x60] ss:$8 sps:$4 sm:$0xff]   ;;  %v4217_v48 = vld [vmem:[%s5932_s3 + $0xd0] ss:$8 sps:$4 sm:$0xff]  }
  0xbc   :  { %1846 = vmatprep.subr.bf16.mxu1 %v3858_v3  ;;  %v3677_v3 = vcombine.low %v100_v34, %v104_v57  ;;  %v176_v52 = vld [vmem:[%s5930_s1 + $0x438] sm:$0xff] }
  0xbd   :  { %1951 = vmatpush1.bf16.msra.mxu0 %v3851_v2  ;;  %v4201_v2 = vld [vmem:[%s5932_s3 + $0x74] ss:$8 sps:$4 sm:$0xff]   ;;  %v4223_v57 = vld [vmem:[%s5932_s3 + $0xf0] ss:$8 sps:$4 sm:$0xff]  }
  0xbe   :  { %1952 = vmatprep.subr.bf16.mxu0 %v3860_v4  ;;  %v3686_v4 = vcombine.high %v108_v59, %v112_v0  ;;  %v184_v34 = vld [vmem:[%s5930_s1 + $0x478] sm:$0xff] }
  0xbf   :  { %1847 = vmatpush1.bf16.msra.mxu1 %v3857_v9  ;;  %v3685_v9 = vcombine.low %v108_v59, %v112_v0  ;;  %v192_v59 = vld [vmem:[%s5930_s1 + $0x4b8] sm:$0xff]  ;;  %v4438_v0 = vld [vmem:[%s5931_s0] ss:$16 sps:$4 sm:$0xff]  }
  0xc0   :  { %1848 = vmatprep.subr.bf16.mxu1 %v3866_v11  ;;  %v124_v11 = vld [vmem:[%s5930_s1 + $0x298] sm:$0xff] }
  0xc1   :  { %1953 = vmatpush1.bf16.msra.mxu0 %v3859_v10  ;;  %v3694_v10 = vcombine.high %v116_v5, %v120_v6 }
  0xc2   :  { %1954 = vmatprep.subr.bf16.mxu0 %v3868_v13  ;;  %v128_v13 = vld [vmem:[%s5930_s1 + $0x2b8] sm:$0xff] }
  0xc3   :  { %1849 = vmatpush1.bf16.msra.mxu1 %v3865_v16  ;;  %v3693_v16 = vcombine.low %v116_v5, %v120_v6  ;;  %v200_v5 = vld [vmem:[%s5930_s1 + $0x4f8] sm:$0xff]  ;;  %v299_v6 = vlaneseq }
  0xc4   :  { %1977 = vmatprep.subr.bf16.mxu1 %v3622_v18  ;;  %v132_v18 = vld [vmem:[%s5930_s1 + $0x2d8] sm:$0xff] }
  0xc5   :  { %1955 = vmatpush1.bf16.msra.mxu0 %v3867_v17  ;;  %v3702_v17 = vcombine.high %v124_v11, %v128_v13 }
  0xc6   :  { %2911 = vmatprep.subr.bf16.mxu0 %v4180_v21  ;;  %1851 = vmatmul.mubr.bf16.vlgmr.msra.gmra.mrb[8].mxu1 %v5144_v28  ;;  %v4210_v21 = vld [vmem:[%s5932_s3 + $0xa4] ss:$8 sps:$4 sm:$0xff]  }
  0xc7   :  { %1978 = vmatpush1.bf16.msra.mxu1 %v3621_v23  ;;  %1860 = vmatprep.mubr.bf16.mxu1 %v5154_v31  ;;  %v3701_v23 = vcombine.low %v124_v11, %v128_v13  ;;  %v5372_v11 = vshrl.u32 %v299_v6, 7  ;;  %v4440_v13 = vld [vmem:[%s5931_s0 + $0x20] ss:$16 sps:$4 sm:$0xff]  }
  0xc8   :  { %1957 = vmatmul.mubr.bf16.vlgmr.msra.gmra.mrb[8].mxu0 %v5144_v28  ;;  %1979 = vmatprep.subr.bf16.mxu1 %v3630_v24  ;;  %v3710_v24 = vcombine.high %v132_v18, %v136_v19 }
  0xc9   :  { %2912 = vmatpush1.bf16.msra.mxu0 %v4178_v27  ;;  %1966 = vmatprep.mubr.bf16.mxu0 %v5154_v31  ;;  %v4208_v27 = vld [vmem:[%s5932_s3 + $0xa0] ss:$8 sps:$4 sm:$0xff]  }
  0xca   :  { %2913 = vmatprep.subr.bf16.mxu0 %v4183_v29  ;;  %v4213_v29 = vld [vmem:[%s5932_s3 + $0xb4] ss:$8 sps:$4 sm:$0xff]  }
  0xcb   :  { %1980 = vmatpush1.bf16.msra.mxu1 %v3629_v30  ;;  %v3709_v30 = vcombine.low %v132_v18, %v136_v19  ;;  %v216_v18 = vld [vmem:[%s5930_s1 + $0x578] sm:$0xff]  ;;  %v5387_v19 = vsub.s32 0, %v5372_v11 }
  0xcc   :  { %1981 = vmatprep.subr.bf16.mxu1 %v3638_v32  ;;  %v3718_v32 = vcombine.high %v140_v25, %v144_v26 }
  0xcd   :  { %2914 = vmatpush1.bf16.msra.mxu0 %v4181_v36  ;;  %v4211_v36 = vld [vmem:[%s5932_s3 + $0xb0] ss:$8 sps:$4 sm:$0xff]  }
  0xce   :  { %1861 = vmatmul.mubr.bf16.gmra.mrb[12].mxu1 %v5182_v42  ;;  %2915 = vmatprep.subr.bf16.mxu0 %v4186_v37  ;;  %v4216_v37 = vld [vmem:[%s5932_s3 + $0xc4] ss:$8 sps:$4 sm:$0xff]  }
  0xcf   :  { %1982 = vmatpush1.bf16.msra.mxu1 %v3637_v38  ;;  %2009 = vmatprep.mubr.bf16.mxu1 %v4437_v46  ;;  %v3717_v38 = vcombine.low %v140_v25, %v144_v26  ;;  %v164_v46 = vld [vmem:[%s5930_s1 + $0x3d8] sm:$0xff] }
  0xd0   :  { %1967 = vmatmul.mubr.bf16.gmra.mrb[12].mxu0 %v5182_v42  ;;  %1983 = vmatprep.subr.bf16.mxu1 %v3646_v39  ;;  %v3726_v39 = vcombine.high %v148_v33, %v152_v35  ;;  %v220_v25 = vld [vmem:[%s5930_s1 + $0x598] sm:$0xff] }
  0xd1   :  { %2916 = vmatpush1.bf16.msra.mxu0 %v4184_v12  ;;  %v4214_v12 = vld [vmem:[%s5932_s3 + $0xc0] ss:$8 sps:$4 sm:$0xff]   ;;  %v224_v26 = vld [vmem:[%s5930_s1 + $0x5b8] sm:$0xff] }
  0xd2   :  { %2917 = vmatprep.subr.bf16.mxu0 %v4189_v43  ;;  %v4219_v43 = vld [vmem:[%s5932_s3 + $0xd4] ss:$8 sps:$4 sm:$0xff]  }
  0xd3   :  { %1984 = vmatpush1.bf16.msra.mxu1 %v3645_v44  ;;  %v3725_v44 = vcombine.low %v148_v33, %v152_v35  ;;  %v228_v35 = vld [vmem:[%s5930_s1 + $0x5d8] sm:$0xff] }
  0xd4   :  { %1985 = vmatprep.subr.bf16.mxu1 %v3654_v45  ;;  %v3734_v45 = vcombine.high %v156_v40, %v160_v41 }
  0xd5   :  { %2918 = vmatpush1.bf16.msra.mxu0 %v4187_v22  ;;  %v4222_v22 = vld [vmem:[%s5932_s3 + $0xe4] ss:$8 sps:$4 sm:$0xff]  }
  0xd6   :  { %2919 = vmatprep.subr.bf16.mxu0 %v4192_v49  ;;  %v3733_v49 = vcombine.low %v156_v40, %v160_v41 }
  0xd7   :  { %1986 = vmatpush1.bf16.msra.mxu1 %v3653_v50  ;;  %v3742_v50 = vcombine.high %v164_v46, %v168_v47 }
  0xd8   :  { %1987 = vmatprep.subr.bf16.mxu1 %v3662_v51  ;;  %v172_v51 = vld [vmem:[%s5930_s1 + $0x418] sm:$0xff] }
  0xd9   :  { %2920 = vmatpush1.bf16.msra.mxu0 %v4190_v54  ;;  %v4225_v54 = vld [vmem:[%s5932_s3 + $0xf4] ss:$8 sps:$4 sm:$0xff]  }
  0xda   :  { %2921 = vmatprep.subr.bf16.mxu0 %v4195_v55  ;;  %v3741_v55 = vcombine.low %v164_v46, %v168_v47 }
  0xdb   :  { %1988 = vmatpush1.bf16.msra.mxu1 %v3661_v56  ;;  %v3750_v56 = vcombine.high %v172_v51, %v176_v52 }
  0xdc   :  { %1989 = vmatprep.subr.bf16.mxu1 %v3670_v58  ;;  %v180_v58 = vld [vmem:[%s5930_s1 + $0x458] sm:$0xff] }
  0xdd   :  { %2922 = vmatpush1.bf16.msra.mxu0 %v4193_v60  ;;  %v4228_v60 = vld [vmem:[%s5932_s3 + $0x104] ss:$8 sps:$4 sm:$0xff]  }
  0xde   :  { %2923 = vmatprep.subr.bf16.mxu0 %v4198_v61  ;;  %v3749_v61 = vcombine.low %v172_v51, %v176_v52  ;;  %v236_v51 = vld [vmem:[%s5930_s1 + $0x618] sm:$0xff] }
  0xdf   :  { %1990 = vmatpush1.bf16.msra.mxu1 %v3669_v62  ;;  %v3758_v62 = vcombine.high %v180_v58, %v184_v34  ;;  %v240_v52 = vld [vmem:[%s5930_s1 + $0x638] sm:$0xff] }
  0xe0   :  { %1991 = vmatprep.subr.bf16.mxu1 %v3678_v63  ;;  %v188_v63 = vld [vmem:[%s5930_s1 + $0x498] sm:$0xff] }
  0xe1   :  { %2924 = vmatpush1.bf16.msra.mxu0 %v4196_v1  ;;  %v3757_v1 = vcombine.low %v180_v58, %v184_v34  ;;  %v3814_v34 = vcombine.high %v236_v51, %v240_v52 }
  0xe2   :  { %2925 = vmatprep.subr.bf16.mxu0 %v4201_v2  ;;  %v4439_v2 = vld [vmem:[%s5931_s0 + $0x24] ss:$16 sps:$4 sm:$0xff]  }
  0xe3   :  { %1992 = vmatpush1.bf16.msra.mxu1 %v3677_v3  ;;  %v3766_v3 = vcombine.high %v188_v63, %v192_v59 }
  0xe4   :  { %1993 = vmatprep.subr.bf16.mxu1 %v3686_v4  ;;  %v196_v4 = vld [vmem:[%s5930_s1 + $0x4d8] sm:$0xff] }
  0xe5   :  { %2926 = vmatpush1.bf16.msra.mxu0 %v4199_v7  ;;  %v3765_v7 = vcombine.low %v188_v63, %v192_v59 }
  0xe6   :  { %2927 = vmatprep.subr.bf16.mxu0 %v4204_v8  ;;  %v3774_v8 = vcombine.high %v196_v4, %v200_v5 }
  0xe7   :  { %1994 = vmatpush1.bf16.msra.mxu1 %v3685_v9  ;;  %v204_v9 = vld [vmem:[%s5930_s1 + $0x518] sm:$0xff] }
  0xe8   :  { %1995 = vmatprep.subr.bf16.mxu1 %v3694_v10  ;;  %v208_v10 = vld [vmem:[%s5930_s1 + $0x538] sm:$0xff] }
  0xe9   :  { %2928 = vmatpush1.bf16.msra.mxu0 %v4202_v14  ;;  %v3773_v14 = vcombine.low %v196_v4, %v200_v5  ;;  %v3813_v4 = vcombine.low %v236_v51, %v240_v52  ;;  %v4240_v51 = vld [vmem:[%s5932_s3 + $0x144] ss:$8 sps:$4 sm:$0xff]   ;;  %v276_v52 = vld [vmem:[%s5930_s1 + $0x758] sm:$0xff] }
  0xea   :  { %2929 = vmatprep.subr.bf16.mxu0 %v4207_v15  ;;  %v4441_v15 = vld [vmem:[%s5931_s0 + $0xc] ss:$16 sps:$4 sm:$0xff]  }
  0xeb   :  { %1996 = vmatpush1.bf16.msra.mxu1 %v3693_v16  ;;  %v3782_v16 = vcombine.high %v204_v9, %v208_v10 }
  0xec   :  { %1997 = vmatprep.subr.bf16.mxu1 %v3702_v17  ;;  %v212_v17 = vld [vmem:[%s5930_s1 + $0x558] sm:$0xff] }
  0xed   :  { %2930 = vmatpush1.bf16.msra.mxu0 %v4205_v20  ;;  %v3781_v20 = vcombine.low %v204_v9, %v208_v10 }
  0xee   :  { %2931 = vmatprep.subr.bf16.mxu0 %v4210_v21  ;;  %v5392_v21 = vld [vmem:[%s5933_s2] sm:$0xff] }
  0xef   :  { %1998 = vmatpush1.bf16.msra.mxu1 %v3701_v23  ;;  %v5395_v23 = vsub.s32 1, %v5372_v11 }
  0xf0   :  { %1999 = vmatprep.subr.bf16.mxu1 %v3710_v24  ;;  %v3790_v24 = vcombine.high %v212_v17, %v216_v18 }
  0xf1   :  { %2932 = vmatpush1.bf16.msra.mxu0 %v4208_v27  ;;  %v302_v27 = vrot.slane %v5392_v21, %v5387_v19 }
  0xf2   :  { %2933 = vmatprep.subr.bf16.mxu0 %v4213_v29  ;;  %v306_v29 = vrot.slane %v5392_v21, %v5395_v23 }
  0xf3   :  { %2000 = vmatpush1.bf16.msra.mxu1 %v3709_v30  ;;  %v3789_v30 = vcombine.low %v212_v17, %v216_v18  ;;  %v252_v17 = vld [vmem:[%s5930_s1 + $0x698] sm:$0xff] }
  0xf4   :  { %2001 = vmatprep.subr.bf16.mxu1 %v3718_v32  ;;  %v3798_v32 = vcombine.high %v220_v25, %v224_v26  ;;  %v256_v18 = vld [vmem:[%s5930_s1 + $0x6b8] sm:$0xff] }
  0xf5   :  { %2934 = vmatpush1.bf16.msra.mxu0 %v4211_v36  ;;  %v232_v36 = vld [vmem:[%s5930_s1 + $0x5f8] sm:$0xff] }
  0xf6   :  { %2935 = vmatprep.subr.bf16.mxu0 %v4216_v37 }
  0xf7   :  { %2002 = vmatpush1.bf16.msra.mxu1 %v3717_v38 }
  0xf8   :  { %2003 = vmatprep.subr.bf16.mxu1 %v3726_v39 }
  0xf9   :  { %2936 = vmatpush1.bf16.msra.mxu0 %v4214_v12 }
  0xfa   :  { %2937 = vmatprep.subr.bf16.mxu0 %v4219_v43  ;;  %v3797_v43 = vcombine.low %v220_v25, %v224_v26 }
  0xfb   :  { %2004 = vmatpush1.bf16.msra.mxu1 %v3725_v44 }
  0xfc   :  { %2005 = vmatprep.subr.bf16.mxu1 %v3734_v45 }
  0xfd   :  { %2938 = vmatpush1.bf16.msra.mxu0 %v4217_v48  ;;  %v3806_v48 = vcombine.high %v228_v35, %v232_v36 }
  0xfe   :  { %2939 = vmatprep.subr.bf16.mxu0 %v4222_v22 }
  0xff   :  { %2006 = vmatpush1.bf16.msra.mxu1 %v3733_v49 }
 0x100   :  { %2007 = vmatprep.subr.bf16.mxu1 %v3742_v50 }
 0x101   :  { %2940 = vmatpush1.bf16.msra.mxu0 %v4220_v53 }
 0x102   :  { %2941 = vmatprep.subr.bf16.mxu0 %v4225_v54 }
 0x103   :  { %2008 = vmatpush1.bf16.msra.mxu1 %v3741_v55 }
 0x104   :  { %2030 = vmatprep.subr.bf16.mxu1 %v3750_v56  ;;  %v3805_v56 = vcombine.low %v228_v35, %v232_v36  ;;  %v4229_v35 = vld [vmem:[%s5932_s3 + $0x110] ss:$8 sps:$4 sm:$0xff]   ;;  %v3830_v36 = vcombine.high %v252_v17, %v256_v18 }
 0x105   :  { %2942 = vmatpush1.bf16.msra.mxu0 %v4223_v57 }
 0x106   :  { %2010 = vmatmul.mubr.bf16.vlgmr.msra.gmra.mrb[16].mxu1 %v4438_v0  ;;  %2964 = vmatprep.subr.bf16.mxu0 %v4228_v60 }
 0x107   :  { %2031 = vmatpush1.bf16.msra.mxu1 %v3749_v61  ;;  %2019 = vmatprep.mubr.bf16.mxu1 %v4439_v2  ;;  %v244_v61 = vld [vmem:[%s5930_s1 + $0x658] sm:$0xff] }
 0x108   :  { %2032 = vmatprep.subr.bf16.mxu1 %v3758_v62  ;;  %v248_v62 = vld [vmem:[%s5930_s1 + $0x678] sm:$0xff] }
 0x109   :  { %v3822_v9 = vcombine.high %v244_v61, %v248_v62 }
 0x10b   :  { %2033 = vmatpush1.bf16.msra.mxu1 %v3757_v1 }
 0x10c   :  { %2034 = vmatprep.subr.bf16.mxu1 %v3766_v3 }
 0x10e   :  { %2020 = vmatmul.mubr.bf16.gmra.mrb[20].mxu1 %v4440_v13 }
 0x10f   :  { %2035 = vmatpush1.bf16.msra.mxu1 %v3765_v7  ;;  %2062 = vmatprep.mubr.bf16.mxu1 %v4441_v15 }
 0x110   :  { %2036 = vmatprep.subr.bf16.mxu1 %v3774_v8  ;;  %v4226_v8 = vld [vmem:[%s5932_s3 + $0x100] ss:$8 sps:$4 sm:$0xff]  }
 0x113   :  { %2037 = vmatpush1.bf16.msra.mxu1 %v3773_v14 }
 0x114   :  { %2038 = vmatprep.subr.bf16.mxu1 %v3782_v16  ;;  %v4231_v16 = vld [vmem:[%s5932_s3 + $0x114] ss:$8 sps:$4 sm:$0xff]  }
 0x117   :  { %2039 = vmatpush1.bf16.msra.mxu1 %v3781_v20 }
 0x118   :  { %2040 = vmatprep.subr.bf16.mxu1 %v3790_v24 }
 0x119   :  { %v1693_v33 = vpop.f32.mrb[0].mxu1 }
 0x11a   :  { %v1694_v37 = vadd.f32 %v1693_v33, %v302_v27  ;;  %v1695_v38 = vpop.f32.mrb[1].mxu1 }
 0x11b   :  { %v1746_v39 = vpop.f32.mrb[0].mxu0  ;;  %v1696_v40 = vadd.f32 %v1695_v38, %v306_v29  ;;  %v1697_v41 = vpop.f32.mrb[2].mxu1  ;;  %2041 = vmatpush1.bf16.msra.mxu1 %v3789_v30  ;;  %v3821_v30 = vcombine.low %v244_v61, %v248_v62  ;;  %v260_v38 = vld [vmem:[%s5930_s1 + $0x6d8] sm:$0xff] }
 0x11c   :  { %v1748_v12 = vpop.f32.mrb[1].mxu0  ;;  %v1698_v44 = vadd.f32 %v1697_v41, %v302_v27  ;;  %v1747_v45 = vadd.f32 %v1746_v39, %v1694_v37  ;;  %v1699_v46 = vpop.f32.mrb[3].mxu1  ;;  %2042 = vmatprep.subr.bf16.mxu1 %v3798_v32  ;;  %v264_v39 = vld [vmem:[%s5930_s1 + $0x6f8] sm:$0xff] }
 0x11d   :  { %v1750_v47 = vpop.f32.mrb[2].mxu0  ;;  %v1700_v22 = vadd.f32 %v1699_v46, %v306_v29  ;;  %v1749_v49 = vadd.f32 %v1748_v12, %v1696_v40  ;;  %v3829_v12 = vcombine.low %v252_v17, %v256_v18  ;;  %v4237_v46 = vld [vmem:[%s5932_s3 + $0x134] ss:$8 sps:$4 sm:$0xff]   ;;  %v4241_v61 = vld [vmem:[%s5932_s3 + $0x150] ss:$8 sps:$4 sm:$0xff]  }
 0x11e   :  { %v1752_v50 = vpop.f32.mrb[3].mxu0  ;;  %v2083_v53 = vmax.f32 %v1747_v45, 0.0  ;;  %v1751_v54 = vadd.f32 %v1750_v47, %v1698_v44  ;;  %v4232_v44 = vld [vmem:[%s5932_s3 + $0x120] ss:$8 sps:$4 sm:$0xff]   ;;  %v3838_v45 = vcombine.high %v260_v38, %v264_v39  ;;  %v268_v47 = vld [vmem:[%s5930_s1 + $0x718] sm:$0xff] }
 0x11f   :  { %v1753_v55 = vadd.f32 %v1752_v50, %v1700_v22  ;;  %2043 = vmatpush1.bf16.msra.mxu1 %v3797_v43  ;;  %v2084_v57 = vmax.f32 %v1749_v49, 0.0  ;;  %v3837_v22 = vcombine.low %v260_v38, %v264_v39  ;;  %v4235_v49 = vld [vmem:[%s5932_s3 + $0x130] ss:$8 sps:$4 sm:$0xff]   ;;  %v4270_v18 = vld [vmem:[%s5932_s3 + $0x1e4] ss:$8 sps:$4 sm:$0xff]  }
 0x120   :  { %v2091_v58 = vmax.f32 %v1751_v54, 0.0  ;;  %2044 = vmatprep.subr.bf16.mxu1 %v3806_v48  ;;  %v272_v48 = vld [vmem:[%s5930_s1 + $0x738] sm:$0xff] }
 0x121   :  { %v2092_v60 = vmax.f32 %v1753_v55, 0.0  ;;  %v1703_v63 = vpop.f32.mrb[4].mxu1  ;;  %v3846_v50 = vcombine.high %v268_v47, %v272_v48  ;;  %v3845_v54 = vcombine.low %v268_v47, %v272_v48  ;;  %v4238_v55 = vld [vmem:[%s5932_s3 + $0x140] ss:$8 sps:$4 sm:$0xff]   ;;  %v4265_v17 = vld [vmem:[%s5932_s3 + $0x1d0] ss:$8 sps:$4 sm:$0xff]  }
 0x122   :  { %v2115_v59 = vpack.c.bf16 %v2091_v58, %v2083_v53  ;;  %v1704_v0 = vadd.f32 %v1703_v63, %v302_v27  ;;  %v1705_v1 = vpop.f32.mrb[5].mxu1  ;;  %v280_v53 = vld [vmem:[%s5930_s1 + $0x778] sm:$0xff]  ;;  %v4246_v63 = vld [vmem:[%s5932_s3 + $0x164] ss:$8 sps:$4 sm:$0xff]  }
 0x123   :  { %v1756_v2 = vpop.f32.mrb[4].mxu0  ;;  %v2116_v3 = vpack.c.bf16 %v2092_v60, %v2084_v57  ;;  %2045 = vmatpush1.bf16.msra.mxu1 %v3805_v56  ;;  %v1706_v5 = vadd.f32 %v1705_v1, %v306_v29  ;;  %v1707_v6 = vpop.f32.mrb[6].mxu1  ;;  %v3854_v56 = vcombine.high %v276_v52, %v280_v53  ;;  %v4243_v58 = vld [vmem:[%s5932_s3 + $0x154] ss:$8 sps:$4 sm:$0xff]   ;;  %v3853_v60 = vcombine.low %v276_v52, %v280_v53 }
 0x124   :  { %v1758_v7 = vpop.f32.mrb[5].mxu0  ;;  %2046 = vmatprep.subr.bf16.mxu1 %v3814_v34  ;;  %v1708_v10 = vadd.f32 %v1707_v6, %v302_v27  ;;  %v1757_v13 = vadd.f32 %v1756_v2, %v1704_v0  ;;  %v1709_v14 = vpop.f32.mrb[7].mxu1  ;;  %v284_v34 = vld [vmem:[%s5930_s1 + $0x798] sm:$0xff]  ;;  %v4244_v2 = vld [vmem:[%s5932_s3 + $0x160] ss:$8 sps:$4 sm:$0xff]  }
 0x125   :  { %v1760_v15 = vpop.f32.mrb[6].mxu0  ;;  %2943 = vmatprep.mubr.bf16.mxu0 %v2116_v3  ;;  %v1710_v20 = vadd.f32 %v1709_v14, %v306_v29  ;;  %v1759_v24 = vadd.f32 %v1758_v7, %v1706_v5  ;;  %v4234_v29 = vld [vmem:[%s5932_s3 + $0x124] ss:$8 sps:$4 sm:$0xff]   ;;  %v288_v57 = vld [vmem:[%s5930_s1 + $0x7b8] sm:$0xff]  ;;  %v4256_v14 = vld [vmem:[%s5932_s3 + $0x1a0] ss:$8 sps:$4 sm:$0xff]  }
 0x126   :  { %v1762_v25 = vpop.f32.mrb[7].mxu0  ;;  %2944 = vmatmul.mubr.bf16.vlgmr.msra.gmra.mrb[16].mxu0 %v2115_v59  ;;  %v2099_v26 = vmax.f32 %v1757_v13, 0.0  ;;  %v1761_v27 = vadd.f32 %v1760_v15, %v1708_v10  ;;  %v3862_v62 = vcombine.high %v284_v34, %v288_v57  ;;  %v292_v59 = vld [vmem:[%s5930_s1 + $0x7d8] sm:$0xff]  ;;  %v3861_v1 = vcombine.low %v284_v34, %v288_v57  ;;  %v4252_v7 = vld [vmem:[%s5932_s3 + $0x184] ss:$8 sps:$4 sm:$0xff]  }
 0x127   :  { %2047 = vmatpush1.bf16.msra.mxu1 %v3813_v4  ;;  %v2100_v32 = vmax.f32 %v1759_v24, 0.0  ;;  %v1763_v33 = vadd.f32 %v1762_v25, %v1710_v20  ;;  %2965 = vmatpush1.bf16.msra.mxu0 %v4226_v8  ;;  %v296_v0 = vld [vmem:[%s5930_s1 + $0x7f8] sm:$0xff]  ;;  %v4250_v8 = vld [vmem:[%s5932_s3 + $0x180] ss:$8 sps:$4 sm:$0xff]   ;;  %v4258_v13 = vld [vmem:[%s5932_s3 + $0x1a4] ss:$8 sps:$4 sm:$0xff]  }
 0x128   :  { %2048 = vmatprep.subr.bf16.mxu1 %v3822_v9  ;;  %v2107_v37 = vmax.f32 %v1761_v27, 0.0  ;;  %2966 = vmatprep.subr.bf16.mxu0 %v4231_v16  ;;  %v3870_v3 = vcombine.high %v292_v59, %v296_v0  ;;  %v4249_v4 = vld [vmem:[%s5932_s3 + $0x174] ss:$8 sps:$4 sm:$0xff]   ;;  %v3869_v5 = vcombine.low %v292_v59, %v296_v0  ;;  %v4247_v6 = vld [vmem:[%s5932_s3 + $0x170] ss:$8 sps:$4 sm:$0xff]   ;;  %v309_v27 = vsub.s32 2, %v5372_v11 }
 0x129   :  { %v2108_v40 = vmax.f32 %v1763_v33, 0.0  ;;  %v4255_v9 = vld [vmem:[%s5932_s3 + $0x194] ss:$8 sps:$4 sm:$0xff]   ;;  %v4253_v10 = vld [vmem:[%s5932_s3 + $0x190] ss:$8 sps:$4 sm:$0xff]   ;;  %v321_v33 = vsub.s32 5, %v5372_v11 }
 0x12a   :  { %v2123_v41 = vpack.c.bf16 %v2107_v37, %v2099_v26  ;;  %v4264_v15 = vld [vmem:[%s5932_s3 + $0x1c4] ss:$8 sps:$4 sm:$0xff]   ;;  %v4262_v16 = vld [vmem:[%s5932_s3 + $0x1c0] ss:$8 sps:$4 sm:$0xff]   ;;  %v4273_v24 = vld [vmem:[%s5932_s3 + $0x1f4] ss:$8 sps:$4 sm:$0xff]  }
 0x12b   :  { %2049 = vmatpush1.bf16.msra.mxu1 %v3821_v30  ;;  %v2124_v43 = vpack.c.bf16 %v2108_v40, %v2100_v32  ;;  %2967 = vmatpush1.bf16.msra.mxu0 %v4229_v35  ;;  %v4268_v20 = vld [vmem:[%s5932_s3 + $0x1e0] ss:$8 sps:$4 sm:$0xff]   ;;  %v4271_v25 = vld [vmem:[%s5932_s3 + $0x1f0] ss:$8 sps:$4 sm:$0xff]   ;;  %v4276_v26 = vld [vmem:[%s5932_s3 + $0x204] ss:$8 sps:$4 sm:$0xff]   ;;  %v310_v35 = vrot.slane %v5392_v21, %v309_v27 }
 0x12c   :  { %2050 = vmatprep.subr.bf16.mxu1 %v3830_v36  ;;  %2968 = vmatprep.subr.bf16.mxu0 %v4234_v29  ;;  %v317_v30 = vsub.s32 4, %v5372_v11  ;;  %v313_v32 = vsub.s32 3, %v5372_v11  ;;  %v322_v29 = vrot.slane %v5392_v21, %v321_v33  ;;  %v4274_v0 = vld [vmem:[%s5932_s3 + $0x200] ss:$8 sps:$4 sm:$0xff]  }
 0x12d   :  { %2953 = vmatprep.mubr.bf16.mxu0 %v2124_v43 }
 0x12e   :  { %2954 = vmatmul.mubr.bf16.gmra.mrb[20].mxu0 %v2123_v41  ;;  %v318_v36 = vrot.slane %v5392_v21, %v317_v30  ;;  %v314_v37 = vrot.slane %v5392_v21, %v313_v32 }
 0x12f   :  { %2051 = vmatpush1.bf16.msra.mxu1 %v3829_v12  ;;  %2969 = vmatpush1.bf16.msra.mxu0 %v4232_v44 }
 0x130   :  { %2052 = vmatprep.subr.bf16.mxu1 %v3838_v45  ;;  %2970 = vmatprep.subr.bf16.mxu0 %v4237_v46 }
 0x133   :  { %2053 = vmatpush1.bf16.msra.mxu1 %v3837_v22  ;;  %2971 = vmatpush1.bf16.msra.mxu0 %v4235_v49 }
 0x134   :  { %2054 = vmatprep.subr.bf16.mxu1 %v3846_v50  ;;  %2972 = vmatprep.subr.bf16.mxu0 %v4240_v51 }
 0x137   :  { %2055 = vmatpush1.bf16.msra.mxu1 %v3845_v54  ;;  %2973 = vmatpush1.bf16.msra.mxu0 %v4238_v55 }
 0x138   :  { %2056 = vmatprep.subr.bf16.mxu1 %v3854_v56  ;;  %2974 = vmatprep.subr.bf16.mxu0 %v4243_v58 }
 0x13b   :  { %2057 = vmatpush1.bf16.msra.mxu1 %v3853_v60  ;;  %2975 = vmatpush1.bf16.msra.mxu0 %v4241_v61 }
 0x13c   :  { %2058 = vmatprep.subr.bf16.mxu1 %v3862_v62  ;;  %2976 = vmatprep.subr.bf16.mxu0 %v4246_v63 }
 0x13f   :  { %2059 = vmatpush1.bf16.msra.mxu1 %v3861_v1  ;;  %2977 = vmatpush1.bf16.msra.mxu0 %v4244_v2 }
 0x140   :  { %2060 = vmatprep.subr.bf16.mxu1 %v3870_v3  ;;  %2978 = vmatprep.subr.bf16.mxu0 %v4249_v4  ;;  %v4279_v4 = vld [vmem:[%s5932_s3 + $0x214] ss:$8 sps:$4 sm:$0xff]  }
 0x143   :  { %2061 = vmatpush1.bf16.msra.mxu1 %v3869_v5  ;;  %2979 = vmatpush1.bf16.msra.mxu0 %v4247_v6 }
 0x144   :  { %2980 = vmatprep.subr.bf16.mxu0 %v4252_v7 }
 0x146   :  { %2063 = vmatmul.mubr.bf16.vlgmr.msra.gmra.mrb[16].mxu1 %v5144_v28  ;;  %v4261_v28 = vld [vmem:[%s5932_s3 + $0x1b4] ss:$8 sps:$4 sm:$0xff]  }
 0x147   :  { %2072 = vmatprep.mubr.bf16.mxu1 %v5154_v31  ;;  %2981 = vmatpush1.bf16.msra.mxu0 %v4250_v8  ;;  %v4259_v31 = vld [vmem:[%s5932_s3 + $0x1b0] ss:$8 sps:$4 sm:$0xff]  }
 0x148   :  { %2982 = vmatprep.subr.bf16.mxu0 %v4255_v9 }
 0x14b   :  { %2983 = vmatpush1.bf16.msra.mxu0 %v4253_v10 }
 0x14c   :  { %2984 = vmatprep.subr.bf16.mxu0 %v4258_v13 }
 0x14e   :  { %2073 = vmatmul.mubr.bf16.gmra.mrb[20].mxu1 %v5182_v42  ;;  %v4267_v42 = vld [vmem:[%s5932_s3 + $0x1d4] ss:$8 sps:$4 sm:$0xff]  }
 0x14f   :  { %2985 = vmatpush1.bf16.msra.mxu0 %v4256_v14 }
 0x150   :  { %2986 = vmatprep.subr.bf16.mxu0 %v4261_v28 }
 0x153   :  { %2987 = vmatpush1.bf16.msra.mxu0 %v4259_v31 }
 0x154   :  { %2988 = vmatprep.subr.bf16.mxu0 %v4264_v15  ;;  %v4277_v15 = vld [vmem:[%s5932_s3 + $0x210] ss:$8 sps:$4 sm:$0xff]  }
 0x157   :  { %2989 = vmatpush1.bf16.msra.mxu0 %v4262_v16 }
 0x158   :  { %2990 = vmatprep.subr.bf16.mxu0 %v4267_v42 }
 0x15b   :  { %2991 = vmatpush1.bf16.msra.mxu0 %v4265_v17 }
 0x15c   :  { %2992 = vmatprep.subr.bf16.mxu0 %v4270_v18 }
 0x15f   :  { %2993 = vmatpush1.bf16.msra.mxu0 %v4268_v20 }
 0x160   :  { %2994 = vmatprep.subr.bf16.mxu0 %v4273_v24  ;;  %v4282_v24 = vld [vmem:[%s5932_s3 + $0x224] ss:$8 sps:$4 sm:$0xff]  }
 0x163   :  { %2995 = vmatpush1.bf16.msra.mxu0 %v4271_v25 }
 0x164   :  { %3017 = vmatprep.subr.bf16.mxu0 %v4276_v26 }
 0x199   :  { %v1852_v38 = vpop.f32.mrb[8].mxu1 }
 0x19a   :  { %v4086_v39 = vadd.f32 %v1852_v38, %v310_v35  ;;  %v1854_v41 = vpop.f32.mrb[9].mxu1 }
 0x19b   :  { %v1958_v40 = vpop.f32.mrb[8].mxu0  ;;  %v4087_v43 = vadd.f32 %v1854_v41, %v314_v37  ;;  %v1856_v45 = vpop.f32.mrb[10].mxu1  ;;  %v4288_v41 = vld [vmem:[%s5932_s3 + $0x244] ss:$8 sps:$4 sm:$0xff]  }
 0x19c   :  { %v4094_v12 = vadd.f32 %v1958_v40, %v318_v36  ;;  %v1960_v44 = vpop.f32.mrb[9].mxu0  ;;  %v4088_v47 = vadd.f32 %v1856_v45, %v310_v35  ;;  %v1858_v22 = vpop.f32.mrb[11].mxu1  ;;  %v2085_v53 = vmax.f32 %v4086_v39, 0.0  ;;  %v4285_v39 = vld [vmem:[%s5932_s3 + $0x234] ss:$8 sps:$4 sm:$0xff]  }
 0x19d   :  { %v4095_v46 = vadd.f32 %v1960_v44, %v322_v29  ;;  %v1962_v48 = vpop.f32.mrb[10].mxu0  ;;  %v4089_v51 = vadd.f32 %v1858_v22, %v314_v37  ;;  %v2086_v58 = vmax.f32 %v4087_v43, 0.0  ;;  %v4372_v43 = vld [vmem:[%s5934_s5 + $0x4] ss:$8 sps:$4 sm:$0xff]   ;;  %v4375_v44 = vld [vmem:[%s5934_s5 + $0x14] ss:$8 sps:$4 sm:$0xff]  }
 0x19e   :  { %v2087_v49 = vmax.f32 %v4094_v12, 0.0  ;;  %v4096_v50 = vadd.f32 %v1962_v48, %v318_v36  ;;  %v1964_v52 = vpop.f32.mrb[11].mxu0  ;;  %v2093_v55 = vmax.f32 %v4088_v47, 0.0  ;;  %v4370_v12 = vld [vmem:[%s5934_s5] ss:$8 sps:$4 sm:$0xff]   ;;  %3382 = vmatprep.subr.bf16.mxu1 %v4372_v43 }
 0x19f   :  { %v2088_v54 = vmax.f32 %v4095_v46, 0.0  ;;  %v4097_v56 = vadd.f32 %v1964_v52, %v322_v29  ;;  %v2094_v57 = vmax.f32 %v4089_v51, 0.0  ;;  %v4286_v45 = vld [vmem:[%s5932_s3 + $0x240] ss:$8 sps:$4 sm:$0xff]   ;;  %v4291_v46 = vld [vmem:[%s5932_s3 + $0x254] ss:$8 sps:$4 sm:$0xff]   ;;  %3383 = vmatpush1.bf16.msra.mxu1 %v4370_v12 }
 0x1a0   :  { %v2095_v34 = vmax.f32 %v4096_v50, 0.0  ;;  %v2117_v60 = vpack.c.bf16 %v2093_v55, %v2085_v53  ;;  %v4373_v47 = vld [vmem:[%s5934_s5 + $0x10] ss:$8 sps:$4 sm:$0xff]   ;;  %3384 = vmatprep.subr.bf16.mxu1 %v4375_v44  ;;  %v4378_v48 = vld [vmem:[%s5934_s5 + $0x24] ss:$8 sps:$4 sm:$0xff]  }
 0x1a1   :  { %v2096_v61 = vmax.f32 %v4097_v56, 0.0  ;;  %v2118_v63 = vpack.c.bf16 %v2094_v57, %v2086_v58  ;;  %v1862_v59 = vpop.f32.mrb[12].mxu1  ;;  %v4289_v22 = vld [vmem:[%s5932_s3 + $0x250] ss:$8 sps:$4 sm:$0xff]   ;;  %v4294_v50 = vld [vmem:[%s5932_s3 + $0x264] ss:$8 sps:$4 sm:$0xff]  }
 0x1a2   :  { %v5568_v62 = vpack.c.bf16 %v2095_v34, %v2087_v49  ;;  %v4090_v2 = vadd.f32 %v1862_v59, %v310_v35  ;;  %v1864_v3 = vpop.f32.mrb[13].mxu1  ;;  %v4376_v49 = vld [vmem:[%s5934_s5 + $0x20] ss:$8 sps:$4 sm:$0xff]   ;;  %v4381_v51 = vld [vmem:[%s5934_s5 + $0x34] ss:$8 sps:$4 sm:$0xff]  }
 0x1a3   :  { %v2120_v1 = vpack.c.bf16 %v2096_v61, %v2088_v54  ;;  %v1968_v5 = vpop.f32.mrb[12].mxu0  ;;  %v4091_v6 = vadd.f32 %v1864_v3, %v314_v37  ;;  %v1866_v7 = vpop.f32.mrb[14].mxu1  ;;  %2996 = vmatprep.mubr.bf16.mxu0 %v2118_v63  ;;  %3385 = vmatpush1.bf16.msra.mxu1 %v4373_v47  ;;  %v4292_v52 = vld [vmem:[%s5932_s3 + $0x260] ss:$8 sps:$4 sm:$0xff]   ;;  %v4379_v53 = vld [vmem:[%s5934_s5 + $0x30] ss:$8 sps:$4 sm:$0xff]  }
 0x1a4   :  { %v4098_v8 = vadd.f32 %v1968_v5, %v318_v36  ;;  %v1970_v9 = vpop.f32.mrb[13].mxu0  ;;  %v4092_v10 = vadd.f32 %v1866_v7, %v310_v35  ;;  %v1868_v13 = vpop.f32.mrb[15].mxu1  ;;  %2997 = vmatmul.mubr.bf16.vlgmr.msra.gmra.mrb[16].mxu0 %v2117_v60  ;;  %v2101_v18 = vmax.f32 %v4090_v2, 0.0  ;;  %3386 = vmatprep.subr.bf16.mxu1 %v4378_v48  ;;  %v4297_v54 = vld [vmem:[%s5932_s3 + $0x274] ss:$8 sps:$4 sm:$0xff]   ;;  %v329_v47 = vsub.s32 7, %v5372_v11 }
 0x1a5   :  { %v4099_v14 = vadd.f32 %v1970_v9, %v322_v29  ;;  %v1972_v28 = vpop.f32.mrb[14].mxu0  ;;  %v4093_v31 = vadd.f32 %v1868_v13, %v314_v37  ;;  %3018 = vmatpush1.bf16.msra.mxu0 %v4274_v0  ;;  %v2102_v27 = vmax.f32 %v4091_v6, 0.0  ;;  %v4384_v55 = vld [vmem:[%s5934_s5 + $0x44] ss:$8 sps:$4 sm:$0xff]   ;;  %v4295_v56 = vld [vmem:[%s5932_s3 + $0x270] ss:$8 sps:$4 sm:$0xff]  }
 0x1a6   :  { %v2103_v16 = vmax.f32 %v4098_v8, 0.0  ;;  %v4100_v42 = vadd.f32 %v1972_v28, %v318_v36  ;;  %v1974_v17 = vpop.f32.mrb[15].mxu0  ;;  %v2109_v20 = vmax.f32 %v4092_v10, 0.0  ;;  %3019 = vmatprep.subr.bf16.mxu0 %v4279_v4  ;;  %v4280_v36 = vld [vmem:[%s5932_s3 + $0x220] ss:$8 sps:$4 sm:$0xff]  }
 0x1a7   :  { %v2104_v25 = vmax.f32 %v4099_v14, 0.0  ;;  %v4101_v26 = vadd.f32 %v1974_v17, %v322_v29  ;;  %v2110_v30 = vmax.f32 %v4093_v31, 0.0  ;;  %v4283_v29 = vld [vmem:[%s5932_s3 + $0x230] ss:$8 sps:$4 sm:$0xff]   ;;  %3387 = vmatpush1.bf16.msra.mxu1 %v4376_v49  ;;  %v4382_v58 = vld [vmem:[%s5934_s5 + $0x40] ss:$8 sps:$4 sm:$0xff]  }
 0x1a8   :  { %v2111_v32 = vmax.f32 %v4100_v42, 0.0  ;;  %v2125_v33 = vpack.c.bf16 %v2109_v20, %v2101_v18  ;;  %3388 = vmatprep.subr.bf16.mxu1 %v4381_v51  ;;  %v4300_v34 = vld [vmem:[%s5932_s3 + $0x284] ss:$8 sps:$4 sm:$0xff]   ;;  %v4387_v57 = vld [vmem:[%s5934_s5 + $0x54] ss:$8 sps:$4 sm:$0xff]  }
 0x1a9   :  { %v2112_v35 = vmax.f32 %v4101_v26, 0.0  ;;  %v2126_v37 = vpack.c.bf16 %v2110_v30, %v2102_v27  ;;  %3020 = vmatpush1.bf16.msra.mxu0 %v4277_v15  ;;  %v4298_v60 = vld [vmem:[%s5932_s3 + $0x280] ss:$8 sps:$4 sm:$0xff]   ;;  %v4385_v61 = vld [vmem:[%s5934_s5 + $0x50] ss:$8 sps:$4 sm:$0xff]  }
 0x1aa   :  { %v5585_v38 = vpack.c.bf16 %v2111_v32, %v2103_v16  ;;  %3021 = vmatprep.subr.bf16.mxu0 %v4282_v24  ;;  %v4303_v63 = vld [vmem:[%s5932_s3 + $0x294] ss:$8 sps:$4 sm:$0xff]   ;;  %v4390_v59 = vld [vmem:[%s5934_s5 + $0x64] ss:$8 sps:$4 sm:$0xff]   ;;  %v4301_v0 = vld [vmem:[%s5932_s3 + $0x290] ss:$8 sps:$4 sm:$0xff]  }
 0x1ab   :  { %v5590_v40 = vpack.c.bf16 %v2112_v35, %v2104_v25  ;;  %3006 = vmatprep.mubr.bf16.mxu0 %v2126_v37  ;;  %3389 = vmatpush1.bf16.msra.mxu1 %v4379_v53  ;;  %v4306_v2 = vld [vmem:[%s5932_s3 + $0x2a4] ss:$8 sps:$4 sm:$0xff]   ;;  %v4304_v3 = vld [vmem:[%s5932_s3 + $0x2a0] ss:$8 sps:$4 sm:$0xff]   ;;  %v4309_v4 = vld [vmem:[%s5932_s3 + $0x2b4] ss:$8 sps:$4 sm:$0xff]  }
 0x1ac   :  { %3007 = vmatmul.mubr.bf16.gmra.mrb[20].mxu0 %v2125_v33  ;;  %3390 = vmatprep.subr.bf16.mxu1 %v4384_v55  ;;  %v4307_v5 = vld [vmem:[%s5932_s3 + $0x2b0] ss:$8 sps:$4 sm:$0xff]   ;;  %v4312_v6 = vld [vmem:[%s5932_s3 + $0x2c4] ss:$8 sps:$4 sm:$0xff]   ;;  %v4310_v7 = vld [vmem:[%s5932_s3 + $0x2c0] ss:$8 sps:$4 sm:$0xff]  }
 0x1ad   :  { %3022 = vmatpush1.bf16.msra.mxu0 %v4280_v36  ;;  %3049 = vmatprep.mubr.bf16.mxu0 %v2120_v1  ;;  %v4388_v1 = vld [vmem:[%s5934_s5 + $0x60] ss:$8 sps:$4 sm:$0xff]   ;;  %v4315_v8 = vld [vmem:[%s5932_s3 + $0x2d4] ss:$8 sps:$4 sm:$0xff]   ;;  %v4313_v9 = vld [vmem:[%s5932_s3 + $0x2d0] ss:$8 sps:$4 sm:$0xff]  }
 0x1ae   :  { %3023 = vmatprep.subr.bf16.mxu0 %v4285_v39  ;;  %v4318_v10 = vld [vmem:[%s5932_s3 + $0x2e4] ss:$8 sps:$4 sm:$0xff]   ;;  %v4316_v13 = vld [vmem:[%s5932_s3 + $0x2e0] ss:$8 sps:$4 sm:$0xff]   ;;  %v4321_v14 = vld [vmem:[%s5932_s3 + $0x2f4] ss:$8 sps:$4 sm:$0xff]  }
 0x1af   :  { %3391 = vmatpush1.bf16.msra.mxu1 %v4382_v58  ;;  %v4319_v28 = vld [vmem:[%s5932_s3 + $0x2f0] ss:$8 sps:$4 sm:$0xff]   ;;  %v4324_v31 = vld [vmem:[%s5932_s3 + $0x304] ss:$8 sps:$4 sm:$0xff]   ;;  %v4322_v15 = vld [vmem:[%s5932_s3 + $0x300] ss:$8 sps:$4 sm:$0xff]  }
 0x1b0   :  { %3392 = vmatprep.subr.bf16.mxu1 %v4387_v57  ;;  %v4327_v16 = vld [vmem:[%s5932_s3 + $0x314] ss:$8 sps:$4 sm:$0xff]   ;;  %v4325_v42 = vld [vmem:[%s5932_s3 + $0x310] ss:$8 sps:$4 sm:$0xff]   ;;  %v4330_v17 = vld [vmem:[%s5932_s3 + $0x324] ss:$8 sps:$4 sm:$0xff]  }
 0x1b1   :  { %3024 = vmatpush1.bf16.msra.mxu0 %v4283_v29  ;;  %v4328_v18 = vld [vmem:[%s5932_s3 + $0x320] ss:$8 sps:$4 sm:$0xff]   ;;  %v4331_v20 = vld [vmem:[%s5932_s3 + $0x330] ss:$8 sps:$4 sm:$0xff]   ;;  %v4336_v24 = vld [vmem:[%s5932_s3 + $0x344] ss:$8 sps:$4 sm:$0xff]  }
 0x1b2   :  { %3025 = vmatprep.subr.bf16.mxu0 %v4288_v41  ;;  %v4334_v25 = vld [vmem:[%s5932_s3 + $0x340] ss:$8 sps:$4 sm:$0xff]   ;;  %v4339_v26 = vld [vmem:[%s5932_s3 + $0x354] ss:$8 sps:$4 sm:$0xff]   ;;  %v4337_v27 = vld [vmem:[%s5932_s3 + $0x350] ss:$8 sps:$4 sm:$0xff]  }
 0x1b3   :  { %3393 = vmatpush1.bf16.msra.mxu1 %v4385_v61  ;;  %v4342_v30 = vld [vmem:[%s5932_s3 + $0x364] ss:$8 sps:$4 sm:$0xff]   ;;  %v4340_v32 = vld [vmem:[%s5932_s3 + $0x360] ss:$8 sps:$4 sm:$0xff]   ;;  %v4345_v33 = vld [vmem:[%s5932_s3 + $0x374] ss:$8 sps:$4 sm:$0xff]  }
 0x1b4   :  { %3394 = vmatprep.subr.bf16.mxu1 %v4390_v59  ;;  %v4343_v35 = vld [vmem:[%s5932_s3 + $0x370] ss:$8 sps:$4 sm:$0xff]   ;;  %v4348_v37 = vld [vmem:[%s5932_s3 + $0x384] ss:$8 sps:$4 sm:$0xff]   ;;  %v4346_v36 = vld [vmem:[%s5932_s3 + $0x380] ss:$8 sps:$4 sm:$0xff]  }
 0x1b5   :  { %3026 = vmatpush1.bf16.msra.mxu0 %v4286_v45  ;;  %v4349_v39 = vld [vmem:[%s5932_s3 + $0x390] ss:$8 sps:$4 sm:$0xff]   ;;  %v4352_v29 = vld [vmem:[%s5932_s3 + $0x3a0] ss:$8 sps:$4 sm:$0xff]   ;;  %v4357_v41 = vld [vmem:[%s5932_s3 + $0x3b4] ss:$8 sps:$4 sm:$0xff]  }
 0x1b6   :  { %3027 = vmatprep.subr.bf16.mxu0 %v4291_v46  ;;  %v4355_v12 = vld [vmem:[%s5932_s3 + $0x3b0] ss:$8 sps:$4 sm:$0xff]   ;;  %v4360_v43 = vld [vmem:[%s5932_s3 + $0x3c4] ss:$8 sps:$4 sm:$0xff]   ;;  %v4358_v44 = vld [vmem:[%s5932_s3 + $0x3c0] ss:$8 sps:$4 sm:$0xff]  }
 0x1b7   :  { %3395 = vmatpush1.bf16.msra.mxu1 %v4388_v1  ;;  %v4363_v45 = vld [vmem:[%s5932_s3 + $0x3d4] ss:$8 sps:$4 sm:$0xff]   ;;  %v325_v46 = vsub.s32 6, %v5372_v11  ;;  %v4361_v48 = vld [vmem:[%s5932_s3 + $0x3d0] ss:$8 sps:$4 sm:$0xff]  }
 0x1b8   :  { %v4366_v49 = vld [vmem:[%s5932_s3 + $0x3e4] ss:$8 sps:$4 sm:$0xff]   ;;  %v4364_v11 = vld [vmem:[%s5932_s3 + $0x3e0] ss:$8 sps:$4 sm:$0xff]  }
 0x1b9   :  { %3028 = vmatpush1.bf16.msra.mxu0 %v4289_v22  ;;  %v326_v22 = vrot.slane %v5392_v21, %v325_v46 }
 0x1ba   :  { %3029 = vmatprep.subr.bf16.mxu0 %v4294_v50  ;;  %v330_v50 = vrot.slane %v5392_v21, %v329_v47  ;;  %v4367_v21 = vld [vmem:[%s5932_s3 + $0x3f0] ss:$8 sps:$4 sm:$0xff]  }
 0x1bd   :  { %3030 = vmatpush1.bf16.msra.mxu0 %v4292_v52 }
 0x1be   :  { %3031 = vmatprep.subr.bf16.mxu0 %v4297_v54  ;;  %v4369_v54 = vld [vmem:[%s5932_s3 + $0x3f4] ss:$8 sps:$4 sm:$0xff]  }
 0x1c1   :  { %3032 = vmatpush1.bf16.msra.mxu0 %v4295_v56 }
 0x1c2   :  { %3033 = vmatprep.subr.bf16.mxu0 %v4300_v34 }
 0x1c5   :  { %3034 = vmatpush1.bf16.msra.mxu0 %v4298_v60 }
 0x1c6   :  { %3035 = vmatprep.subr.bf16.mxu0 %v4303_v63 }
 0x1c9   :  { %3036 = vmatpush1.bf16.msra.mxu0 %v4301_v0 }
 0x1ca   :  { %3037 = vmatprep.subr.bf16.mxu0 %v4306_v2 }
 0x1cd   :  { %3038 = vmatpush1.bf16.msra.mxu0 %v4304_v3 }
 0x1ce   :  { %3039 = vmatprep.subr.bf16.mxu0 %v4309_v4 }
 0x1d1   :  { %3040 = vmatpush1.bf16.msra.mxu0 %v4307_v5 }
 0x1d2   :  { %3041 = vmatprep.subr.bf16.mxu0 %v4312_v6 }
 0x1d5   :  { %3042 = vmatpush1.bf16.msra.mxu0 %v4310_v7 }
 0x1d6   :  { %3043 = vmatprep.subr.bf16.mxu0 %v4315_v8 }
 0x1d9   :  { %3044 = vmatpush1.bf16.msra.mxu0 %v4313_v9 }
 0x1da   :  { %3045 = vmatprep.subr.bf16.mxu0 %v4318_v10 }
 0x1dd   :  { %3046 = vmatpush1.bf16.msra.mxu0 %v4316_v13 }
 0x1de   :  { %3047 = vmatprep.subr.bf16.mxu0 %v4321_v14 }
 0x1e1   :  { %3048 = vmatpush1.bf16.msra.mxu0 %v4319_v28 }
 0x1e2   :  { %3070 = vmatprep.subr.bf16.mxu0 %v4324_v31 }
 0x1e4   :  { %3050 = vmatmul.mubr.bf16.vlgmr.msra.gmra.mrb[16].mxu0 %v5568_v62  ;;  %v4333_v62 = vld [vmem:[%s5932_s3 + $0x334] ss:$8 sps:$4 sm:$0xff]  }
 0x1e5   :  { %3059 = vmatprep.mubr.bf16.mxu0 %v5590_v40  ;;  %3071 = vmatpush1.bf16.msra.mxu0 %v4322_v15  ;;  %v4354_v40 = vld [vmem:[%s5932_s3 + $0x3a4] ss:$8 sps:$4 sm:$0xff]  }
 0x1e6   :  { %3072 = vmatprep.subr.bf16.mxu0 %v4327_v16  ;;  %v4393_v16 = vld [vmem:[%s5934_s5 + $0x74] ss:$8 sps:$4 sm:$0xff]  }
 0x1e7   :  { %3396 = vmatprep.subr.bf16.mxu1 %v4393_v16 }
 0x1e9   :  { %3073 = vmatpush1.bf16.msra.mxu0 %v4325_v42  ;;  %v4391_v42 = vld [vmem:[%s5934_s5 + $0x70] ss:$8 sps:$4 sm:$0xff]  }
 0x1ea   :  { %3074 = vmatprep.subr.bf16.mxu0 %v4330_v17  ;;  %3397 = vmatpush1.bf16.msra.mxu1 %v4391_v42  ;;  %v4396_v17 = vld [vmem:[%s5934_s5 + $0x84] ss:$8 sps:$4 sm:$0xff]  }
 0x1eb   :  { %3398 = vmatprep.subr.bf16.mxu1 %v4396_v17 }
 0x1ec   :  { %3060 = vmatmul.mubr.bf16.gmra.mrb[20].mxu0 %v5585_v38  ;;  %v4351_v38 = vld [vmem:[%s5932_s3 + $0x394] ss:$8 sps:$4 sm:$0xff]  }
 0x1ed   :  { %3075 = vmatpush1.bf16.msra.mxu0 %v4328_v18  ;;  %v4394_v18 = vld [vmem:[%s5934_s5 + $0x80] ss:$8 sps:$4 sm:$0xff]  }
 0x1ee   :  { %3076 = vmatprep.subr.bf16.mxu0 %v4333_v62  ;;  %3399 = vmatpush1.bf16.msra.mxu1 %v4394_v18  ;;  %v4399_v62 = vld [vmem:[%s5934_s5 + $0x94] ss:$8 sps:$4 sm:$0xff]  }
 0x1ef   :  { %3400 = vmatprep.subr.bf16.mxu1 %v4399_v62 }
 0x1f1   :  { %3077 = vmatpush1.bf16.msra.mxu0 %v4331_v20  ;;  %v4397_v20 = vld [vmem:[%s5934_s5 + $0x90] ss:$8 sps:$4 sm:$0xff]  }
 0x1f2   :  { %3078 = vmatprep.subr.bf16.mxu0 %v4336_v24  ;;  %3401 = vmatpush1.bf16.msra.mxu1 %v4397_v20  ;;  %v4402_v24 = vld [vmem:[%s5934_s5 + $0xa4] ss:$8 sps:$4 sm:$0xff]  }
 0x1f3   :  { %3402 = vmatprep.subr.bf16.mxu1 %v4402_v24 }
 0x1f5   :  { %3079 = vmatpush1.bf16.msra.mxu0 %v4334_v25  ;;  %v4400_v25 = vld [vmem:[%s5934_s5 + $0xa0] ss:$8 sps:$4 sm:$0xff]  }
 0x1f6   :  { %3080 = vmatprep.subr.bf16.mxu0 %v4339_v26  ;;  %3403 = vmatpush1.bf16.msra.mxu1 %v4400_v25  ;;  %v4405_v26 = vld [vmem:[%s5934_s5 + $0xb4] ss:$8 sps:$4 sm:$0xff]  }
 0x1f7   :  { %3404 = vmatprep.subr.bf16.mxu1 %v4405_v26 }
 0x1f9   :  { %3081 = vmatpush1.bf16.msra.mxu0 %v4337_v27  ;;  %v4403_v27 = vld [vmem:[%s5934_s5 + $0xb0] ss:$8 sps:$4 sm:$0xff]  }
 0x1fa   :  { %3082 = vmatprep.subr.bf16.mxu0 %v4342_v30  ;;  %3405 = vmatpush1.bf16.msra.mxu1 %v4403_v27  ;;  %v4408_v30 = vld [vmem:[%s5934_s5 + $0xc4] ss:$8 sps:$4 sm:$0xff]  }
 0x1fb   :  { %3406 = vmatprep.subr.bf16.mxu1 %v4408_v30 }
 0x1fd   :  { %3083 = vmatpush1.bf16.msra.mxu0 %v4340_v32  ;;  %v4406_v32 = vld [vmem:[%s5934_s5 + $0xc0] ss:$8 sps:$4 sm:$0xff]  }
 0x1fe   :  { %3084 = vmatprep.subr.bf16.mxu0 %v4345_v33  ;;  %3407 = vmatpush1.bf16.msra.mxu1 %v4406_v32  ;;  %v4411_v33 = vld [vmem:[%s5934_s5 + $0xd4] ss:$8 sps:$4 sm:$0xff]  }
 0x1ff   :  { %3408 = vmatprep.subr.bf16.mxu1 %v4411_v33 }
 0x201   :  { %3085 = vmatpush1.bf16.msra.mxu0 %v4343_v35  ;;  %v4409_v35 = vld [vmem:[%s5934_s5 + $0xd0] ss:$8 sps:$4 sm:$0xff]  }
 0x202   :  { %3086 = vmatprep.subr.bf16.mxu0 %v4348_v37  ;;  %3409 = vmatpush1.bf16.msra.mxu1 %v4409_v35  ;;  %v4414_v37 = vld [vmem:[%s5934_s5 + $0xe4] ss:$8 sps:$4 sm:$0xff]  }
 0x203   :  { %3410 = vmatprep.subr.bf16.mxu1 %v4414_v37 }
 0x205   :  { %3087 = vmatpush1.bf16.msra.mxu0 %v4346_v36  ;;  %v4412_v36 = vld [vmem:[%s5934_s5 + $0xe0] ss:$8 sps:$4 sm:$0xff]  }
 0x206   :  { %3088 = vmatprep.subr.bf16.mxu0 %v4351_v38  ;;  %v4417_v38 = vld [vmem:[%s5934_s5 + $0xf4] ss:$8 sps:$4 sm:$0xff]   ;;  %3411 = vmatpush1.bf16.msra.mxu1 %v4412_v36 }
 0x207   :  { %3412 = vmatprep.subr.bf16.mxu1 %v4417_v38 }
 0x209   :  { %3089 = vmatpush1.bf16.msra.mxu0 %v4349_v39  ;;  %v4415_v39 = vld [vmem:[%s5934_s5 + $0xf0] ss:$8 sps:$4 sm:$0xff]  }
 0x20a   :  { %3090 = vmatprep.subr.bf16.mxu0 %v4354_v40  ;;  %3413 = vmatpush1.bf16.msra.mxu1 %v4415_v39  ;;  %v4418_v40 = vld [vmem:[%s5935_s7 + $0x40] sm:$0xff]  }
 0x20b   :  { %4048 = vmatprep.subr.bf16.mxu1 %v4418_v40 }
 0x20d   :  { %3091 = vmatpush1.bf16.msra.mxu0 %v4352_v29  ;;  %v2259_v29 = vld [vmem:[%s5936_s4] sm:$0x3] }
 0x20e   :  { %3092 = vmatprep.subr.bf16.mxu0 %v4357_v41  ;;  %v2264_v41 = vrot.slane %v2259_v29, %v5387_v19 }
 0x211   :  { %3093 = vmatpush1.bf16.msra.mxu0 %v4355_v12  ;;  %v2268_v12 = vrot.slane %v2259_v29, %v5395_v23 }
 0x212   :  { %3094 = vmatprep.subr.bf16.mxu0 %v4360_v43 }
 0x215   :  { %3095 = vmatpush1.bf16.msra.mxu0 %v4358_v44 }
 0x216   :  { %3096 = vmatprep.subr.bf16.mxu0 %v4363_v45 }
 0x219   :  { %v2064_v51 = vpop.f32.mrb[16].mxu1  ;;  %3097 = vmatpush1.bf16.msra.mxu0 %v4361_v48 }
 0x21a   :  { %v4102_v52 = vadd.f32 %v2064_v51, %v326_v22  ;;  %v2066_v53 = vpop.f32.mrb[17].mxu1  ;;  %3098 = vmatprep.subr.bf16.mxu0 %v4366_v49 }
 0x21b   :  { %v4103_v55 = vadd.f32 %v2066_v53, %v330_v50  ;;  %v2068_v56 = vpop.f32.mrb[18].mxu1 }
 0x21c   :  { %v4104_v58 = vadd.f32 %v2068_v56, %v326_v22  ;;  %v2070_v34 = vpop.f32.mrb[19].mxu1  ;;  %v2089_v60 = vmax.f32 %v4102_v52, 0.0 }
 0x21d   :  { %v4105_v57 = vadd.f32 %v2070_v34, %v330_v50  ;;  %3099 = vmatpush1.bf16.msra.mxu0 %v4364_v11  ;;  %v2090_v63 = vmax.f32 %v4103_v55, 0.0 }
 0x21e   :  { %v2097_v61 = vmax.f32 %v4104_v58, 0.0  ;;  %3100 = vmatprep.subr.bf16.mxu0 %v4369_v54 }
 0x21f   :  { %v2098_v59 = vmax.f32 %v4105_v57, 0.0 }
 0x220   :  { %v2121_v0 = vpack.c.bf16 %v2097_v61, %v2089_v60 }
 0x221   :  { %v2122_v1 = vpack.c.bf16 %v2098_v59, %v2090_v63  ;;  %v2074_v2 = vpop.f32.mrb[20].mxu1  ;;  %3101 = vmatpush1.bf16.msra.mxu0 %v4367_v21 }
 0x222   :  { %v4106_v3 = vadd.f32 %v2074_v2, %v326_v22  ;;  %v2076_v4 = vpop.f32.mrb[21].mxu1 }
 0x223   :  { %v4107_v5 = vadd.f32 %v2076_v4, %v330_v50  ;;  %v2078_v6 = vpop.f32.mrb[22].mxu1  ;;  %3102 = vmatprep.mubr.bf16.mxu0 %v2122_v1 }
 0x224   :  { %v4108_v7 = vadd.f32 %v2078_v6, %v326_v22  ;;  %v2080_v8 = vpop.f32.mrb[23].mxu1  ;;  %3103 = vmatmul.mubr.bf16.vlgmr.msra.gmra.mrb[16].mxu0 %v2121_v0  ;;  %v2105_v10 = vmax.f32 %v4106_v3, 0.0 }
 0x225   :  { %v4109_v9 = vadd.f32 %v2080_v8, %v330_v50  ;;  %v2106_v14 = vmax.f32 %v4107_v5, 0.0 }
 0x226   :  { %v2113_v13 = vmax.f32 %v4108_v7, 0.0 }
 0x227   :  { %v2114_v28 = vmax.f32 %v4109_v9, 0.0 }
 0x228   :  { %v2129_v31 = vpack.c.bf16 %v2113_v13, %v2105_v10 }
 0x229   :  { %v2130_v15 = vpack.c.bf16 %v2114_v28, %v2106_v14 }
 0x22b   :  { %3112 = vmatprep.mubr.bf16.mxu0 %v2130_v15 }
 0x22c   :  { %3113 = vmatmul.mubr.bf16.gmra.mrb[20].mxu0 %v2129_v31 }
 0x2f7   :  { %v3104_v43 = vpop.f32.mrb[16].mxu0 }
 0x2f8   :  { %v4110_v44 = vadd.f32 %v3104_v43, %v2264_v41  ;;  %v3106_v45 = vpop.f32.mrb[17].mxu0 }
 0x2f9   :  { %v4111_v46 = vadd.f32 %v3106_v45, %v2268_v12  ;;  %v3108_v47 = vpop.f32.mrb[18].mxu0 }
 0x2fa   :  { %v4112_v48 = vadd.f32 %v3108_v47, %v2264_v41  ;;  %v3110_v22 = vpop.f32.mrb[19].mxu0  ;;  %v3123_v50 = vmax.f32 %v4110_v44, 0.0  ;;  %v4419_v44 = vld [vmem:[%s5935_s7] sm:$0xff]   ;;  %v4421_v47 = vld [vmem:[%s5935_s7 + $0x8] sm:$0xff]  }
 0x2fb   :  { %v4113_v49 = vadd.f32 %v3110_v22, %v2268_v12  ;;  %v3124_v11 = vmax.f32 %v4111_v46, 0.0  ;;  %v4420_v46 = vld [vmem:[%s5935_s7 + $0x48] sm:$0xff]   ;;  %v4423_v22 = vld [vmem:[%s5935_s7 + $0x10] sm:$0xff]  }
 0x2fc   :  { %v3125_v51 = vmax.f32 %v4112_v48, 0.0  ;;  %v4422_v48 = vld [vmem:[%s5935_s7 + $0x50] sm:$0xff]  }
 0x2fd   :  { %v3126_v52 = vmax.f32 %v4113_v49, 0.0  ;;  %v4424_v49 = vld [vmem:[%s5935_s7 + $0x58] sm:$0xff]  }
 0x2fe   :  { %v3131_v53 = vmax.f32 %v3123_v50, %v3125_v51  ;;  %v4425_v50 = vld [vmem:[%s5935_s7 + $0x18] sm:$0xff]   ;;  %v4426_v51 = vld [vmem:[%s5935_s7 + $0x60] sm:$0xff]  }
 0x2ff   :  { %v3138_v54 = vmax.f32 %v3124_v11, %v3126_v52  ;;  %v3114_v55 = vpop.f32.mrb[20].mxu0  ;;  %v4427_v11 = vld [vmem:[%s5935_s7 + $0x20] sm:$0xff]   ;;  %v4428_v52 = vld [vmem:[%s5935_s7 + $0x68] sm:$0xff]  }
 0x300   :  { %v3132_v56 = vrot.slane %v3131_v53, 4  ;;  %v4114_v58 = vadd.f32 %v3114_v55, %v2264_v41  ;;  %v3116_v34 = vpop.f32.mrb[21].mxu0  ;;  %v4431_v55 = vld [vmem:[%s5935_s7 + $0x30] sm:$0xff]  }
 0x301   :  { %v3139_v57 = vrot.slane %v3138_v54, 4  ;;  %v4115_v21 = vadd.f32 %v3116_v34, %v2268_v12  ;;  %v3118_v60 = vpop.f32.mrb[22].mxu0  ;;  %v3195_v34 = vld [vmem:[%s5937_s6] sm:$0x3] }
 0x302   :  { %v3133_v61 = vmax.f32 %v3131_v53, %v3132_v56  ;;  %v4116_v63 = vadd.f32 %v3118_v60, %v2264_v41  ;;  %v3120_v59 = vpop.f32.mrb[23].mxu0  ;;  %v3127_v3 = vmax.f32 %v4114_v58, 0.0  ;;  %v4429_v53 = vld [vmem:[%s5935_s7 + $0x28] sm:$0xff]   ;;  %v4432_v56 = vld [vmem:[%s5935_s7 + $0x78] sm:$0xff]  }
 0x303   :  { %v3140_v0 = vmax.f32 %v3138_v54, %v3139_v57  ;;  %v4117_v1 = vadd.f32 %v3120_v59, %v2268_v12  ;;  %v3128_v6 = vmax.f32 %v4115_v21, 0.0  ;;  %v4430_v54 = vld [vmem:[%s5935_s7 + $0x70] sm:$0xff]   ;;  %v4433_v58 = vld [vmem:[%s5935_s7 + $0x38] sm:$0xff]   ;;  %v3200_v57 = vrot.slane %v3195_v34, %v5387_v19 }
 0x304   :  { %v3134_v2 = vrot.slane %v3133_v61, 2  ;;  %v3129_v4 = vmax.f32 %v4116_v63, 0.0  ;;  %v3204_v21 = vrot.slane %v3195_v34, %v5395_v23 }
 0x305   :  { %v3141_v5 = vrot.slane %v3140_v0, 2  ;;  %v3130_v7 = vmax.f32 %v4117_v1, 0.0 }
 0x306   :  { %v3135_v8 = vmax.f32 %v3133_v61, %v3134_v2  ;;  %v3145_v9 = vmax.f32 %v3127_v3, %v3129_v4 }
 0x307   :  { %v3142_v10 = vmax.f32 %v3140_v0, %v3141_v5  ;;  %v3152_v13 = vmax.f32 %v3128_v6, %v3130_v7  ;;  %v4031_v7 = vld [vmem:[%s5938_s8] ss:$0 sm:$0xff] }
 0x308   :  { %v3146_v14 = vrot.slane %v3145_v9, 4  ;;  %v3136_v31 = vrot.slane %v3135_v8, 1 }
 0x309   :  { %v3153_v28 = vrot.slane %v3152_v13, 4  ;;  %v3143_v16 = vrot.slane %v3142_v10, 1 }
 0x30a   :  { %v3147_v15 = vmax.f32 %v3145_v9, %v3146_v14  ;;  %v3137_v62 = vmax.f32 %v3135_v8, %v3136_v31 }
 0x30b   :  { %v3154_v42 = vmax.f32 %v3152_v13, %v3153_v28  ;;  %v3144_v24 = vmax.f32 %v3142_v10, %v3143_v16 }
 0x30c   :  { %v3148_v17 = vrot.slane %v3147_v15, 2  ;;  %v3159_v30 = vpack.c.bf16 %v3137_v62, %v3137_v62 }
 0x30d   :  { %v3155_v18 = vrot.slane %v3154_v42, 2  ;;  %v3160_v35 = vpack.c.bf16 %v3144_v24, %v3144_v24 }
 0x30e   :  { %v3149_v20 = vmax.f32 %v3147_v15, %v3148_v17  ;;  %v3211_v38 = vunpack.c.l.b16 %v3159_v30 }
 0x30f   :  { %v3156_v25 = vmax.f32 %v3154_v42, %v3155_v18  ;;  %v3212_v40 = vunpack.c.l.b16 %v3160_v35 }
 0x310   :  { %v3150_v26 = vrot.slane %v3149_v20, 1 }
 0x311   :  { %v3157_v27 = vrot.slane %v3156_v25, 1 }
 0x312   :  { %v3151_v32 = vmax.f32 %v3149_v20, %v3150_v26 }
 0x313   :  { %v3158_v33 = vmax.f32 %v3156_v25, %v3157_v27 }
 0x314   :  { %v3161_v37 = vpack.c.bf16 %v3151_v32, %v3151_v32 }
 0x315   :  { %v3162_v36 = vpack.c.bf16 %v3158_v33, %v3158_v33 }
 0x316   :  { %v3213_v39 = vunpack.c.l.b16 %v3161_v37 }
 0x317   :  { %v3214_v29 = vunpack.c.l.b16 %v3162_v36 }
 0x318   :  { %v3216_v41 = vsel %vm3215_vm0, %v3213_v39, %v3211_v38 }
 0x319   :  { %v3217_v12 = vsel %vm3215_vm0, %v3214_v29, %v3212_v40  ;;  %v3218_v45 = vpack.c.b16 %v3216_v41, %v3216_v41 }
 0x31a   :  { %v3219_v43 = vpack.c.b16 %v3217_v12, %v3217_v12 }
 0x31c   :  { %3414 = vmatprep.mubr.bf16.mxu1 %v3219_v43 }
 0x31d   :  { %3415 = vmatmul.mubr.bf16.vlgmr.msra.gmra.mrb[24].mxu1 %v3218_v45 }
 0x31e   :  { %4049 = vmatpush3.bf16.msra.mxu1 %v4419_v44 }
 0x31f   :  { %4050 = vmatprep.subr.bf16.mxu1 %v4420_v46 }
 0x322   :  { %4051 = vmatpush3.bf16.msra.mxu1 %v4421_v47 }
 0x323   :  { %4052 = vmatprep.subr.bf16.mxu1 %v4422_v48 }
 0x326   :  { %4053 = vmatpush3.bf16.msra.mxu1 %v4423_v22 }
 0x327   :  { %4054 = vmatprep.subr.bf16.mxu1 %v4424_v49 }
 0x32a   :  { %4055 = vmatpush3.bf16.msra.mxu1 %v4425_v50 }
 0x32b   :  { %4056 = vmatprep.subr.bf16.mxu1 %v4426_v51 }
 0x32e   :  { %4057 = vmatpush3.bf16.msra.mxu1 %v4427_v11 }
 0x32f   :  { %4058 = vmatprep.subr.bf16.mxu1 %v4428_v52 }
 0x332   :  { %4059 = vmatpush3.bf16.msra.mxu1 %v4429_v53 }
 0x333   :  { %4060 = vmatprep.subr.bf16.mxu1 %v4430_v54 }
 0x336   :  { %4061 = vmatpush3.bf16.msra.mxu1 %v4431_v55 }
 0x337   :  { %4062 = vmatprep.subr.bf16.mxu1 %v4432_v56 }
 0x33a   :  { %4063 = vmatpush3.bf16.msra.mxu1 %v4433_v58 }
 0x3f0   :  { %v3416_v60 = vpop.f32.mrb[24].mxu1 }
 0x3f1   :  { %v3417_v61 = vadd.f32 %v3416_v60, %v3200_v57  ;;  %v3418_v63 = vpop.f32.mrb[25].mxu1 }
 0x3f2   :  { %v3419_v59 = vadd.f32 %v3418_v63, %v3204_v21  ;;  %v3420_v0 = vpop.f32.mrb[26].mxu1 }
 0x3f3   :  { %v3423_v1 = vmax.f32 %v3417_v61, 0.0  ;;  %v3421_v2 = vpop.f32.mrb[27].mxu1 }
 0x3f4   :  { %v3424_v3 = vmax.f32 %v3419_v59, 0.0 }
 0x3f5   :  { %v3425_v5 = vpack.c.bf16 %v3423_v1, %v3423_v1 }
 0x3f6   :  { %v3426_v4 = vpack.c.bf16 %v3424_v3, %v3424_v3 }
 0x3f8   :  { %3594 = vmatprep.mubr.bf16.mxu1 %v3426_v4 }
 0x3f9   :  { %3595 = vmatmul.mubr.bf16.vlgmr.msra.gmra.mrb[28].mxu1 %v3425_v5 }
 0x4cc   :  { %v4064_v6 = vpop.f32.mrb[28].mxu1 }
 0x4cd   :  { %v4065_v19 = vpop.f32.mrb[29].mxu1 }
 0x4ce   :  { %v4066_v8 = vadd.f32 %v4065_v19, %v4064_v6  ;;  %v4067_v23 = vpop.f32.mrb[30].mxu1 }
 0x4cf   :  { %v4068_v9 = vpop.f32.mrb[31].mxu1 }
 0x4d0   :  { %v3597_v10 = vadd.f32 %v4066_v8, %v4031_v7 }
 0x4d2   :  { %3602 = vst [vmem:[%s5939_s9] sm:$0x3] %v3597_v10 }

</bundles_post_ra>
